<compile_context>
chip_gen: v7x
topology: tpu7x:2x2x1
jax: 0.10.0
libtpu: 0.0.40
codegen_flags: <defaults>
</compile_context>

<pallas_src>
import functools
import math

import jax
import jax.numpy as jnp
from jax.experimental import pallas as pl
from jax.experimental.pallas import tpu as pltpu

_VMEM_LIMIT = 32 * 1024 * 1024  # safe scoped-VMEM ceiling on v5e / v6e / v7x


def _pick_tile(dim, pref, align):
    """Largest tile <= pref that is `align`-aligned and divides `dim`, else the full dim."""
    if dim <= pref:
        return dim
    t = (pref // align) * align
    while t >= align:
        if dim % t == 0:
            return t
        t -= align
    return dim


# ----------------------------- Pallas kernels ------------------------------

def _linear_kernel(x_ref, w_ref, b_ref, o_ref, acc_ref, *, activation):
    @pl.when(pl.program_id(2) == 0)
    def _init():
        acc_ref[...] = jnp.zeros_like(acc_ref)

    acc_ref[...] += jnp.dot(x_ref[...], w_ref[...],
                            preferred_element_type=jnp.float32)

    @pl.when(pl.program_id(2) == pl.num_programs(2) - 1)
    def _finalize():
        y = acc_ref[...] + b_ref[...]
        if activation == "relu":
            y = jnp.maximum(y, 0.0)
        o_ref[...] = y.astype(o_ref.dtype)


def linear(x, w, b, activation="none"):
    """x:(M,K) @ w:(K,N) bf16 + b:(1,N) f32 -> (M,N) f32 with optional fused ReLU."""
    M, K = x.shape
    N = w.shape[1]
    tm = _pick_tile(M, 256, 8)
    tn = _pick_tile(N, 512, 128)
    tk = _pick_tile(K, 512, 128)
    grid = (M // tm, N // tn, K // tk)
    cost = pl.CostEstimate(
        flops=int(2 * M * N * K),
        transcendentals=0,
        bytes_accessed=int(M * K * 2 + K * N * 2 + N * 4 + M * N * 4))
    return pl.pallas_call(
        functools.partial(_linear_kernel, activation=activation),
        grid_spec=pltpu.PrefetchScalarGridSpec(
            num_scalar_prefetch=0,
            grid=grid,
            in_specs=[
                pl.BlockSpec((tm, tk), lambda i, j, k: (i, k)),
                pl.BlockSpec((tk, tn), lambda i, j, k: (k, j)),
                pl.BlockSpec((1, tn), lambda i, j, k: (0, j)),
            ],
            out_specs=pl.BlockSpec((tm, tn), lambda i, j, k: (i, j)),
            scratch_shapes=[pltpu.VMEM((tm, tn), jnp.float32)]),
        out_shape=jax.ShapeDtypeStruct((M, N), jnp.float32),
        compiler_params=pltpu.CompilerParams(
            dimension_semantics=("parallel", "parallel", "arbitrary"),
            vmem_limit_bytes=_VMEM_LIMIT),
        cost_estimate=cost,
    )(x.astype(jnp.bfloat16), w.astype(jnp.bfloat16), b)


def _ffn_kernel(x_ref, w1_ref, b1_ref, w2_ref, b2_ref, o_ref, acc_ref):
    @pl.when(pl.program_id(1) == 0)
    def _init():
        acc_ref[...] = jnp.zeros_like(acc_ref)

    h = jnp.dot(x_ref[...], w1_ref[...], preferred_element_type=jnp.float32)
    h = jnp.maximum(h + b1_ref[...], 0.0).astype(w2_ref.dtype)
    acc_ref[...] += jnp.dot(h, w2_ref[...], preferred_element_type=jnp.float32)

    @pl.when(pl.program_id(1) == pl.num_programs(1) - 1)
    def _finalize():
        o_ref[...] = (acc_ref[...] + b2_ref[...]).astype(o_ref.dtype)


def ffn(x, w1, b1, w2, b2):
    """relu(x @ w1 + b1) @ w2 + b2, fused: the (M, F) hidden never hits HBM."""
    M, D = x.shape
    F = w1.shape[1]
    tm = _pick_tile(M, 256, 8)
    tf = _pick_tile(F, 512, 128)
    grid = (M // tm, F // tf)
    cost = pl.CostEstimate(
        flops=int(4 * M * D * F),
        transcendentals=0,
        bytes_accessed=int(M * D * 2 + 2 * D * F * 2 + M * D * 4))
    return pl.pallas_call(
        _ffn_kernel,
        grid_spec=pltpu.PrefetchScalarGridSpec(
            num_scalar_prefetch=0,
            grid=grid,
            in_specs=[
                pl.BlockSpec((tm, D), lambda i, f: (i, 0)),
                pl.BlockSpec((D, tf), lambda i, f: (0, f)),
                pl.BlockSpec((1, tf), lambda i, f: (0, f)),
                pl.BlockSpec((tf, D), lambda i, f: (f, 0)),
                pl.BlockSpec((1, D), lambda i, f: (0, 0)),
            ],
            out_specs=pl.BlockSpec((tm, D), lambda i, f: (i, 0)),
            scratch_shapes=[pltpu.VMEM((tm, D), jnp.float32)]),
        out_shape=jax.ShapeDtypeStruct((M, D), jnp.float32),
        compiler_params=pltpu.CompilerParams(
            dimension_semantics=("parallel", "arbitrary"),
            vmem_limit_bytes=_VMEM_LIMIT),
        cost_estimate=cost,
    )(x.astype(jnp.bfloat16), w1, b1, w2, b2)


def _add_layernorm_kernel(x_ref, r_ref, g_ref, b_ref, o_ref):
    x = x_ref[...] + r_ref[...]                 # residual add fused in-kernel, f32
    mu = jnp.mean(x, axis=-1, keepdims=True)
    var = jnp.mean(jnp.square(x - mu), axis=-1, keepdims=True)
    xn = (x - mu) * jax.lax.rsqrt(var + 1e-5)
    o_ref[...] = xn * g_ref[...] + b_ref[...]


def add_layernorm(x, res, g, b):
    """LayerNorm(x + res); statistics kept in f32."""
    M, D = x.shape
    tm = _pick_tile(M, 512, 8)
    grid = (M // tm,)
    return pl.pallas_call(
        _add_layernorm_kernel,
        grid_spec=pltpu.PrefetchScalarGridSpec(
            num_scalar_prefetch=0,
            grid=grid,
            in_specs=[
                pl.BlockSpec((tm, D), lambda i: (i, 0)),
                pl.BlockSpec((tm, D), lambda i: (i, 0)),
                pl.BlockSpec((1, D), lambda i: (0, 0)),
                pl.BlockSpec((1, D), lambda i: (0, 0)),
            ],
            out_specs=pl.BlockSpec((tm, D), lambda i: (i, 0))),
        out_shape=jax.ShapeDtypeStruct((M, D), jnp.float32),
        compiler_params=pltpu.CompilerParams(
            dimension_semantics=("parallel",),
            vmem_limit_bytes=_VMEM_LIMIT),
    )(x, res, g, b)


def _mha_kernel(q_ref, k_ref, v_ref, o_ref, *, nhead, scale, causal):
    # Lane-dense blocks: (Sq, nhead*Dh) per batch element, heads handled in-kernel.
    q = q_ref[0]                                # (Sq, D) bf16
    k = k_ref[0]                                # (Sk, D) bf16
    v = v_ref[0]                                # (Sk, D) bf16
    sq, d = q.shape
    sk = k.shape[0]
    dh = d // nhead
    if causal:
        rows = jax.lax.broadcasted_iota(jnp.int32, (sq, sk), 0)
        cols = jax.lax.broadcasted_iota(jnp.int32, (sq, sk), 1)
        neg = jnp.where(cols > rows, -1e30, 0.0).astype(jnp.float32)
    outs = []
    for h in range(nhead):                      # static unroll over heads
        qh = q[:, h * dh:(h + 1) * dh]
        kh = k[:, h * dh:(h + 1) * dh]
        vh = v[:, h * dh:(h + 1) * dh]
        s = jax.lax.dot_general(qh, kh, (((1,), (1,)), ((), ())),
                                preferred_element_type=jnp.float32) * scale
        if causal:
            s = s + neg
        s = s - jnp.max(s, axis=-1, keepdims=True)
        p = jnp.exp(s)
        p = p * pl.reciprocal(jnp.sum(p, axis=-1, keepdims=True), approx=True)
        outs.append(jnp.dot(p.astype(vh.dtype), vh,
                            preferred_element_type=jnp.float32))
    o_ref[0] = jnp.concatenate(outs, axis=-1).astype(o_ref.dtype)


def mha(x_q, x_kv, p, nhead, *, causal, fused_qkv):
    """Multi-head attention (nn.MultiheadAttention semantics, eval / no dropout)."""
    B, Sq, D = x_q.shape
    Sk = x_kv.shape[1]
    if fused_qkv:                               # self-attention: one (D,3D) projection
        qkv = linear(x_q.reshape(B * Sq, D), p["wqkv"], p["bqkv"])
        q, k, v = qkv[:, :D], qkv[:, D:2 * D], qkv[:, 2 * D:]
    else:                                       # cross-attention: Q from x, fused KV from memory
        q = linear(x_q.reshape(B * Sq, D), p["wq"], p["bq"])
        kv = linear(x_kv.reshape(B * Sk, D), p["wkv"], p["bkv"])
        k, v = kv[:, :D], kv[:, D:]
    q = q.reshape(B, Sq, D).astype(jnp.bfloat16)
    k = k.reshape(B, Sk, D).astype(jnp.bfloat16)
    v = v.reshape(B, Sk, D).astype(jnp.bfloat16)

    scale = 1.0 / math.sqrt(D // nhead)
    cost = pl.CostEstimate(
        flops=int(4 * B * Sq * Sk * D),
        transcendentals=int(B * nhead * Sq * Sk),
        bytes_accessed=int((B * Sq * D + 2 * B * Sk * D) * 2 + B * Sq * D * 4))
    # TODO(synk): full (Sq,Sk) scores per batch; for long sequences switch to a
    #             flash-style kv-tiled grid with online softmax.
    ctx = pl.pallas_call(
        functools.partial(_mha_kernel, nhead=nhead, scale=scale, causal=causal),
        grid_spec=pltpu.PrefetchScalarGridSpec(
            num_scalar_prefetch=0,
            grid=(B,),
            in_specs=[
                pl.BlockSpec((1, Sq, D), lambda b: (b, 0, 0)),
                pl.BlockSpec((1, Sk, D), lambda b: (b, 0, 0)),
                pl.BlockSpec((1, Sk, D), lambda b: (b, 0, 0)),
            ],
            out_specs=pl.BlockSpec((1, Sq, D), lambda b: (b, 0, 0))),
        out_shape=jax.ShapeDtypeStruct((B, Sq, D), jnp.float32),
        compiler_params=pltpu.CompilerParams(
            dimension_semantics=("parallel",),
            vmem_limit_bytes=_VMEM_LIMIT),
        cost_estimate=cost,
    )(q, k, v)
    out = linear(ctx.reshape(B * Sq, D), p["wo"], p["bo"]).reshape(B, Sq, D)
    return out


# ----------------------------- model glue (JAX) -----------------------------

def shift_right(input_ids):
    # decoder_start_token_id = 0
    B = input_ids.shape[0]
    start = jnp.zeros((B, 1), input_ids.dtype)
    return jnp.concatenate([start, input_ids[:, :-1]], axis=1)


def sinusoidal_pe(max_len, d_model):
    position = jnp.arange(max_len, dtype=jnp.float32)[:, None]
    div_term = jnp.exp(jnp.arange(0, d_model, 2, dtype=jnp.float32)
                       * (-math.log(10000.0) / d_model))
    pe = jnp.zeros((max_len, d_model), jnp.float32)
    pe = pe.at[:, 0::2].set(jnp.sin(position * div_term))
    pe = pe.at[:, 1::2].set(jnp.cos(position * div_term))
    return pe


def encoder_layer_forward(x, p, nhead):
    B, S, D = x.shape
    attn = mha(x, x, p["self"], nhead, causal=False, fused_qkv=True)
    xf = add_layernorm(x.reshape(B * S, D), attn.reshape(B * S, D),
                       p["ln1_g"], p["ln1_b"])
    h = ffn(xf, p["w1"], p["b1"], p["w2"], p["b2"])
    xf = add_layernorm(xf, h, p["ln2_g"], p["ln2_b"])
    return xf.reshape(B, S, D)


def decoder_layer_forward(x, memory, p, nhead):
    B, S, D = x.shape
    sa = mha(x, x, p["self"], nhead, causal=True, fused_qkv=True)
    xf = add_layernorm(x.reshape(B * S, D), sa.reshape(B * S, D),
                       p["ln1_g"], p["ln1_b"])
    ca = mha(xf.reshape(B, S, D), memory, p["cross"], nhead,
             causal=False, fused_qkv=False)
    xf = add_layernorm(xf, ca.reshape(B * S, D), p["ln2_g"], p["ln2_b"])
    h = ffn(xf, p["w1"], p["b1"], p["w2"], p["b2"])
    xf = add_layernorm(xf, h, p["ln3_g"], p["ln3_b"])
    return xf.reshape(B, S, D)


def text_module_forward(params, src_ids, tgt_ids, config):
    D = config["d_model"]
    H = config["nhead"]
    V = config["vocab_size"]
    emb = params["embedding"]      # (V, D) f32 gather table (tied weights)
    pe = params["pe"]              # (max_len, D)

    # ---- TextEncoder.forward: embedding -> PE -> encoder stack (no readout) ----
    B, Ss = src_ids.shape
    x = jnp.take(emb, src_ids, axis=0) + pe[:Ss][None]
    for lp in params["enc_layers"]:
        x = encoder_layer_forward(x, lp, H)
    memory = x

    # ---- TextDecoder.forward: embedding -> PE -> causal decoder -> tied LMHead ----
    tgt = shift_right(tgt_ids)
    St = tgt.shape[1]
    y = jnp.take(emb, tgt, axis=0) + pe[:St][None]
    for lp in params["dec_layers"]:
        y = decoder_layer_forward(y, memory, lp, H)
    logits = linear(y.reshape(B * St, D), params["lm_w"],
                    params["lm_bias"]).reshape(B, St, V)
    return memory, logits


# ----------------------------- deterministic init ---------------------------

def _init_linear(key, fan_in, fan_out):
    k1, k2 = jax.random.split(key)
    bound = 1.0 / math.sqrt(fan_in)
    w = jax.random.uniform(k1, (fan_in, fan_out), jnp.float32, -bound, bound)
    b = jax.random.uniform(k2, (fan_out,), jnp.float32, -bound, bound)
    return w.astype(jnp.bfloat16), b.reshape(1, fan_out)  # bf16 weight, (1,N) f32 bias


def _init_self_mha(key, d):
    ks = jax.random.split(key, 2)
    p = {}
    p["wqkv"], p["bqkv"] = _init_linear(ks[0], d, 3 * d)   # packed in_proj
    p["wo"], p["bo"] = _init_linear(ks[1], d, d)
    return p


def _init_cross_mha(key, d):
    ks = jax.random.split(key, 3)
    p = {}
    p["wq"], p["bq"] = _init_linear(ks[0], d, d)
    p["wkv"], p["bkv"] = _init_linear(ks[1], d, 2 * d)      # packed K|V proj
    p["wo"], p["bo"] = _init_linear(ks[2], d, d)
    return p


def _init_enc_layer(key, d, dff):
    ks = jax.random.split(key, 3)
    p = {"self": _init_self_mha(ks[0], d)}
    p["w1"], p["b1"] = _init_linear(ks[1], d, dff)
    p["w2"], p["b2"] = _init_linear(ks[2], dff, d)
    for n in ("ln1", "ln2"):
        p[n + "_g"] = jnp.ones((1, d), jnp.float32)
        p[n + "_b"] = jnp.zeros((1, d), jnp.float32)
    return p


def _init_dec_layer(key, d, dff):
    ks = jax.random.split(key, 4)
    p = {"self": _init_self_mha(ks[0], d), "cross": _init_cross_mha(ks[1], d)}
    p["w1"], p["b1"] = _init_linear(ks[2], d, dff)
    p["w2"], p["b2"] = _init_linear(ks[3], dff, d)
    for n in ("ln1", "ln2", "ln3"):
        p[n + "_g"] = jnp.ones((1, d), jnp.float32)
        p[n + "_b"] = jnp.zeros((1, d), jnp.float32)
    return p


def init_text_module(key, config):
    d = config["d_model"]
    v = config["vocab_size"]
    dff = config["d_ff_mult"] * d
    ks = jax.random.split(key, 3)
    emb = 0.02 * jax.random.normal(ks[0], (v, d), jnp.float32)
    emb = emb.at[config["categorical_pad_token_id"]].set(0.0)   # _zero_pad
    enc_keys = jax.random.split(ks[1], config["text_encoder_layers"])
    dec_keys = jax.random.split(ks[2], config["text_decoder_layers"])
    return {
        "embedding": emb,                               # f32 table for the gather
        "lm_w": emb.T.astype(jnp.bfloat16),             # tied LM head, transpose hoisted to init
        "lm_bias": jnp.zeros((1, v), jnp.float32),
        "pe": sinusoidal_pe(2048, d),
        "enc_layers": [_init_enc_layer(k, d, dff) for k in enc_keys],
        "dec_layers": [_init_dec_layer(k, d, dff) for k in dec_keys],
    }


# ----------------------------------- main -----------------------------------

if __name__ == "__main__":
    config = {
        "text_model": "custom",
        "vocab_size": 32,
        "d_model": 32,
        "nhead": 4,
        "d_ff_mult": 4,
        "text_encoder_layers": 2,
        "text_decoder_layers": 2,
        "dropout": 0.0,
        "categorical_pad_token_id": 0,
    }
    B, S = 2, 8

    key = jax.random.PRNGKey(0)
    k_param, k_src, k_tgt = jax.random.split(key, 3)
    params = init_text_module(k_param, config)
    src_ids = jax.random.randint(k_src, (B, S), 0, config["vocab_size"], dtype=jnp.int32)
    tgt_ids = jax.random.randint(k_tgt, (B, S), 0, config["vocab_size"], dtype=jnp.int32)

    fwd = jax.jit(functools.partial(text_module_forward, config=config))
    memory, logits = fwd(params, src_ids, tgt_ids)
    jax.block_until_ready((memory, logits))

    assert memory.shape == (B, S, config["d_model"])
    assert logits.shape == (B, S, config["vocab_size"])
    assert bool(jnp.all(jnp.isfinite(memory))) and bool(jnp.all(jnp.isfinite(logits)))
    print("KERNEL_OK")
</pallas_src>

<mosaic_0001>
module attributes {stable_mosaic.version = 11 : i64} {
  func.func @_linear_kernel(%arg0: i32, %arg1: i32, %arg2: i32, %arg3: memref<16x32xbf16, #tpu.memory_space<vmem>>, %arg4: memref<32x96xbf16, #tpu.memory_space<vmem>>, %arg5: memref<1x96xf32, #tpu.memory_space<vmem>>, %arg6: memref<16x96xf32, #tpu.memory_space<vmem>>, %arg7: memref<16x96xf32, #tpu.memory_space<vmem>>) attributes {dimension_semantics = [#tpu.dimension_semantics<parallel>, #tpu.dimension_semantics<parallel>, #tpu.dimension_semantics<arbitrary>], iteration_bounds = array<i64: 1, 1, 1>, scalar_prefetch = 0 : i64, scratch_operands = 1 : i64, tpu.core_type = #tpu.core_type<tc>, window_params = [{transform_indices = @transform_0, window_bounds = array<i64: 16, 32>}, {transform_indices = @transform_1, window_bounds = array<i64: 32, 96>}, {transform_indices = @transform_2, window_bounds = array<i64: 1, 96>}, {transform_indices = @transform_3, window_bounds = array<i64: 16, 96>}]} {
    %c0_i32 = arith.constant 0 : i32
    %0 = arith.cmpi eq, %arg2, %c0_i32 : i32
    %1 = arith.extui %0 : i1 to i32
    %c0_i32_0 = arith.constant 0 : i32
    %2 = arith.cmpi ne, %1, %c0_i32_0 : i32
    scf.if %2 {
      %cst_10 = arith.constant 0.000000e+00 : f32
      %12 = vector.broadcast %cst_10 : f32 to vector<16x96xf32>
      %c0_11 = arith.constant 0 : index
      %c0_12 = arith.constant 0 : index
      %13 = vector.load %arg7[%c0_11, %c0_12] : memref<16x96xf32, #tpu.memory_space<vmem>>, vector<16x96xf32>
      tpu.vector_store %arg7[%c0_11, %c0_12], %12 {strides = array<i32>} : memref<16x96xf32, #tpu.memory_space<vmem>>, vector<16x96xf32>,
    } else {
    }
    %c0 = arith.constant 0 : index
    %c0_1 = arith.constant 0 : index
    %3 = vector.load %arg7[%c0, %c0_1] : memref<16x96xf32, #tpu.memory_space<vmem>>, vector<16x96xf32>
    %c0_2 = arith.constant 0 : index
    %c0_3 = arith.constant 0 : index
    %4 = vector.load %arg3[%c0_2, %c0_3] : memref<16x32xbf16, #tpu.memory_space<vmem>>, vector<16x32xbf16>
    %c0_4 = arith.constant 0 : index
    %c0_5 = arith.constant 0 : index
    %5 = vector.load %arg4[%c0_4, %c0_5] : memref<32x96xbf16, #tpu.memory_space<vmem>>, vector<32x96xbf16>
    %cst = arith.constant dense<0.000000e+00> : vector<16x96xf32>
    %6 = tpu.matmul %4, %5, %cst {dimension_numbers = #tpu.dot_dimension_numbers<[1], [0], [0], [1], [0, 0, 1, 1], [], []>} : vector<16x32xbf16>, vector<32x96xbf16>, vector<16x96xf32> -> vector<16x96xf32>
    %7 = arith.addf %3, %6 : vector<16x96xf32>
    %c0_6 = arith.constant 0 : index
    %c0_7 = arith.constant 0 : index
    %8 = vector.load %arg7[%c0_6, %c0_7] : memref<16x96xf32, #tpu.memory_space<vmem>>, vector<16x96xf32>
    tpu.vector_store %arg7[%c0_6, %c0_7], %7 {strides = array<i32>} : memref<16x96xf32, #tpu.memory_space<vmem>>, vector<16x96xf32>,
    %c0_i32_8 = arith.constant 0 : i32
    %9 = arith.cmpi eq, %arg2, %c0_i32_8 : i32
    %10 = arith.extui %9 : i1 to i32
    %c0_i32_9 = arith.constant 0 : i32
    %11 = arith.cmpi ne, %10, %c0_i32_9 : i32
    scf.if %11 {
      %c0_10 = arith.constant 0 : index
      %c0_11 = arith.constant 0 : index
      %12 = vector.load %arg7[%c0_10, %c0_11] : memref<16x96xf32, #tpu.memory_space<vmem>>, vector<16x96xf32>
      %c0_12 = arith.constant 0 : index
      %c0_13 = arith.constant 0 : index
      %13 = vector.load %arg5[%c0_12, %c0_13] : memref<1x96xf32, #tpu.memory_space<vmem>>, vector<1x96xf32>
      %14 = vector.broadcast %13 : vector<1x96xf32> to vector<16x96xf32>
      %15 = arith.addf %12, %14 : vector<16x96xf32>
      %c0_14 = arith.constant 0 : index
      %c0_15 = arith.constant 0 : index
      %16 = vector.load %arg6[%c0_14, %c0_15] : memref<16x96xf32, #tpu.memory_space<vmem>>, vector<16x96xf32>
      tpu.vector_store %arg6[%c0_14, %c0_15], %15 {strides = array<i32>} : memref<16x96xf32, #tpu.memory_space<vmem>>, vector<16x96xf32>,
    } else {
    }
    return
  }
  func.func @transform_0(%arg0: i32, %arg1: i32, %arg2: i32) -> (i32, i32) {
    %c0_i32 = arith.constant 0 : i32
    return %arg0, %arg2 : i32, i32
  }
  func.func @transform_1(%arg0: i32, %arg1: i32, %arg2: i32) -> (i32, i32) {
    %c0_i32 = arith.constant 0 : i32
    return %arg2, %arg1 : i32, i32
  }
  func.func @transform_2(%arg0: i32, %arg1: i32, %arg2: i32) -> (i32, i32) {
    %c0_i32 = arith.constant 0 : i32
    %c0_i32_0 = arith.constant 0 : i32
    return %c0_i32, %arg1 : i32, i32
  }
  func.func @transform_3(%arg0: i32, %arg1: i32, %arg2: i32) -> (i32, i32) {
    %c0_i32 = arith.constant 0 : i32
    return %arg0, %arg1 : i32, i32
  }
}

module attributes {stable_mosaic.version = 11 : i64} {
  func.func @_linear_kernel(%arg0: i32, %arg1: i32, %arg2: i32, %arg3: memref<16x32xbf16, #tpu.memory_space<vmem>>, %arg4: memref<32x32xbf16, #tpu.memory_space<vmem>>, %arg5: memref<1x32xf32, #tpu.memory_space<vmem>>, %arg6: memref<16x32xf32, #tpu.memory_space<vmem>>, %arg7: memref<16x32xf32, #tpu.memory_space<vmem>>) attributes {dimension_semantics = [#tpu.dimension_semantics<parallel>, #tpu.dimension_semantics<parallel>, #tpu.dimension_semantics<arbitrary>], iteration_bounds = array<i64: 1, 1, 1>, scalar_prefetch = 0 : i64, scratch_operands = 1 : i64, tpu.core_type = #tpu.core_type<tc>, window_params = [{transform_indices = @transform_0, window_bounds = array<i64: 16, 32>}, {transform_indices = @transform_1, window_bounds = array<i64: 32, 32>}, {transform_indices = @transform_2, window_bounds = array<i64: 1, 32>}, {transform_indices = @transform_3, window_bounds = array<i64: 16, 32>}]} {
    %c0_i32 = arith.constant 0 : i32
    %0 = arith.cmpi eq, %arg2, %c0_i32 : i32
    %1 = arith.extui %0 : i1 to i32
    %c0_i32_0 = arith.constant 0 : i32
    %2 = arith.cmpi ne, %1, %c0_i32_0 : i32
    scf.if %2 {
      %cst_10 = arith.constant 0.000000e+00 : f32
      %12 = vector.broadcast %cst_10 : f32 to vector<16x32xf32>
      %c0_11 = arith.constant 0 : index
      %c0_12 = arith.constant 0 : index
      %13 = vector.load %arg7[%c0_11, %c0_12] : memref<16x32xf32, #tpu.memory_space<vmem>>, vector<16x32xf32>
      tpu.vector_store %arg7[%c0_11, %c0_12], %12 {strides = array<i32>} : memref<16x32xf32, #tpu.memory_space<vmem>>, vector<16x32xf32>,
    } else {
    }
    %c0 = arith.constant 0 : index
    %c0_1 = arith.constant 0 : index
    %3 = vector.load %arg7[%c0, %c0_1] : memref<16x32xf32, #tpu.memory_space<vmem>>, vector<16x32xf32>
    %c0_2 = arith.constant 0 : index
    %c0_3 = arith.constant 0 : index
    %4 = vector.load %arg3[%c0_2, %c0_3] : memref<16x32xbf16, #tpu.memory_space<vmem>>, vector<16x32xbf16>
    %c0_4 = arith.constant 0 : index
    %c0_5 = arith.constant 0 : index
    %5 = vector.load %arg4[%c0_4, %c0_5] : memref<32x32xbf16, #tpu.memory_space<vmem>>, vector<32x32xbf16>
    %cst = arith.constant dense<0.000000e+00> : vector<16x32xf32>
    %6 = tpu.matmul %4, %5, %cst {dimension_numbers = #tpu.dot_dimension_numbers<[1], [0], [0], [1], [0, 0, 1, 1], [], []>} : vector<16x32xbf16>, vector<32x32xbf16>, vector<16x32xf32> -> vector<16x32xf32>
    %7 = arith.addf %3, %6 : vector<16x32xf32>
    %c0_6 = arith.constant 0 : index
    %c0_7 = arith.constant 0 : index
    %8 = vector.load %arg7[%c0_6, %c0_7] : memref<16x32xf32, #tpu.memory_space<vmem>>, vector<16x32xf32>
    tpu.vector_store %arg7[%c0_6, %c0_7], %7 {strides = array<i32>} : memref<16x32xf32, #tpu.memory_space<vmem>>, vector<16x32xf32>,
    %c0_i32_8 = arith.constant 0 : i32
    %9 = arith.cmpi eq, %arg2, %c0_i32_8 : i32
    %10 = arith.extui %9 : i1 to i32
    %c0_i32_9 = arith.constant 0 : i32
    %11 = arith.cmpi ne, %10, %c0_i32_9 : i32
    scf.if %11 {
      %c0_10 = arith.constant 0 : index
      %c0_11 = arith.constant 0 : index
      %12 = vector.load %arg7[%c0_10, %c0_11] : memref<16x32xf32, #tpu.memory_space<vmem>>, vector<16x32xf32>
      %c0_12 = arith.constant 0 : index
      %c0_13 = arith.constant 0 : index
      %13 = vector.load %arg5[%c0_12, %c0_13] : memref<1x32xf32, #tpu.memory_space<vmem>>, vector<1x32xf32>
      %14 = vector.broadcast %13 : vector<1x32xf32> to vector<16x32xf32>
      %15 = arith.addf %12, %14 : vector<16x32xf32>
      %c0_14 = arith.constant 0 : index
      %c0_15 = arith.constant 0 : index
      %16 = vector.load %arg6[%c0_14, %c0_15] : memref<16x32xf32, #tpu.memory_space<vmem>>, vector<16x32xf32>
      tpu.vector_store %arg6[%c0_14, %c0_15], %15 {strides = array<i32>} : memref<16x32xf32, #tpu.memory_space<vmem>>, vector<16x32xf32>,
    } else {
    }
    return
  }
  func.func @transform_0(%arg0: i32, %arg1: i32, %arg2: i32) -> (i32, i32) {
    %c0_i32 = arith.constant 0 : i32
    return %arg0, %arg2 : i32, i32
  }
  func.func @transform_1(%arg0: i32, %arg1: i32, %arg2: i32) -> (i32, i32) {
    %c0_i32 = arith.constant 0 : i32
    return %arg2, %arg1 : i32, i32
  }
  func.func @transform_2(%arg0: i32, %arg1: i32, %arg2: i32) -> (i32, i32) {
    %c0_i32 = arith.constant 0 : i32
    %c0_i32_0 = arith.constant 0 : i32
    return %c0_i32, %arg1 : i32, i32
  }
  func.func @transform_3(%arg0: i32, %arg1: i32, %arg2: i32) -> (i32, i32) {
    %c0_i32 = arith.constant 0 : i32
    return %arg0, %arg1 : i32, i32
  }
}

module attributes {stable_mosaic.version = 11 : i64} {
  func.func @_add_layernorm_kernel(%arg0: i32, %arg1: memref<16x32xf32, #tpu.memory_space<vmem>>, %arg2: memref<16x32xf32, #tpu.memory_space<vmem>>, %arg3: memref<1x32xf32, #tpu.memory_space<vmem>>, %arg4: memref<1x32xf32, #tpu.memory_space<vmem>>, %arg5: memref<16x32xf32, #tpu.memory_space<vmem>>) attributes {dimension_semantics = [#tpu.dimension_semantics<parallel>], iteration_bounds = array<i64: 1>, scalar_prefetch = 0 : i64, scratch_operands = 0 : i64, tpu.core_type = #tpu.core_type<tc>, window_params = [{transform_indices = @transform_0, window_bounds = array<i64: 16, 32>}, {transform_indices = @transform_1, window_bounds = array<i64: 16, 32>}, {pipeline_mode = #tpu.pipeline_mode<synchronous>, transform_indices = @transform_2, window_bounds = array<i64: 1, 32>}, {pipeline_mode = #tpu.pipeline_mode<synchronous>, transform_indices = @transform_3, window_bounds = array<i64: 1, 32>}, {transform_indices = @transform_4, window_bounds = array<i64: 16, 32>}]} {
    %c0 = arith.constant 0 : index
    %c0_0 = arith.constant 0 : index
    %0 = vector.load %arg1[%c0, %c0_0] : memref<16x32xf32, #tpu.memory_space<vmem>>, vector<16x32xf32>
    %c0_1 = arith.constant 0 : index
    %c0_2 = arith.constant 0 : index
    %1 = vector.load %arg2[%c0_1, %c0_2] : memref<16x32xf32, #tpu.memory_space<vmem>>, vector<16x32xf32>
    %2 = arith.addf %0, %1 : vector<16x32xf32>
    %cst = arith.constant dense<0.000000e+00> : vector<16xf32>
    %3 = vector.multi_reduction <add>, %2, %cst [1] : vector<16x32xf32> to vector<16xf32>
    %4 = vector.shape_cast %3 : vector<16xf32> to vector<16x1xf32>
    %cst_3 = arith.constant 3.200000e+01 : f32
    %5 = vector.broadcast %cst_3 : f32 to vector<16x1xf32>
    %6 = arith.divf %4, %5 : vector<16x1xf32>
    %7 = vector.broadcast %6 : vector<16x1xf32> to vector<16x32xf32>
    %8 = arith.subf %2, %7 : vector<16x32xf32>
    %9 = arith.mulf %8, %8 : vector<16x32xf32>
    %cst_4 = arith.constant dense<0.000000e+00> : vector<16xf32>
    %10 = vector.multi_reduction <add>, %9, %cst_4 [1] : vector<16x32xf32> to vector<16xf32>
    %11 = vector.shape_cast %10 : vector<16xf32> to vector<16x1xf32>
    %cst_5 = arith.constant 3.200000e+01 : f32
    %12 = vector.broadcast %cst_5 : f32 to vector<16x1xf32>
    %13 = arith.divf %11, %12 : vector<16x1xf32>
    %14 = vector.broadcast %6 : vector<16x1xf32> to vector<16x32xf32>
    %15 = arith.subf %2, %14 : vector<16x32xf32>
    %cst_6 = arith.constant 9.99999974E-6 : f32
    %16 = vector.broadcast %cst_6 : f32 to vector<16x1xf32>
    %17 = arith.addf %13, %16 : vector<16x1xf32>
    %18 = math.rsqrt %17 : vector<16x1xf32>
    %19 = vector.broadcast %18 : vector<16x1xf32> to vector<16x32xf32>
    %20 = arith.mulf %15, %19 : vector<16x32xf32>
    %c0_7 = arith.constant 0 : index
    %c0_8 = arith.constant 0 : index
    %21 = vector.load %arg3[%c0_7, %c0_8] : memref<1x32xf32, #tpu.memory_space<vmem>>, vector<1x32xf32>
    %22 = vector.broadcast %21 : vector<1x32xf32> to vector<16x32xf32>
    %23 = arith.mulf %20, %22 : vector<16x32xf32>
    %c0_9 = arith.constant 0 : index
    %c0_10 = arith.constant 0 : index
    %24 = vector.load %arg4[%c0_9, %c0_10] : memref<1x32xf32, #tpu.memory_space<vmem>>, vector<1x32xf32>
    %25 = vector.broadcast %24 : vector<1x32xf32> to vector<16x32xf32>
    %26 = arith.addf %23, %25 : vector<16x32xf32>
    %c0_11 = arith.constant 0 : index
    %c0_12 = arith.constant 0 : index
    %27 = vector.load %arg5[%c0_11, %c0_12] : memref<16x32xf32, #tpu.memory_space<vmem>>, vector<16x32xf32>
    tpu.vector_store %arg5[%c0_11, %c0_12], %26 {strides = array<i32>} : memref<16x32xf32, #tpu.memory_space<vmem>>, vector<16x32xf32>,
    return
  }
  func.func @transform_0(%arg0: i32) -> (i32, i32) {
    %c0_i32 = arith.constant 0 : i32
    %c0_i32_0 = arith.constant 0 : i32
    return %arg0, %c0_i32 : i32, i32
  }
  func.func @transform_1(%arg0: i32) -> (i32, i32) {
    %c0_i32 = arith.constant 0 : i32
    %c0_i32_0 = arith.constant 0 : i32
    return %arg0, %c0_i32 : i32, i32
  }
  func.func @transform_2(%arg0: i32) -> (i32, i32) {
    %c0_i32 = arith.constant 0 : i32
    %c0_i32_0 = arith.constant 0 : i32
    %c0_i32_1 = arith.constant 0 : i32
    return %c0_i32, %c0_i32_0 : i32, i32
  }
  func.func @transform_3(%arg0: i32) -> (i32, i32) {
    %c0_i32 = arith.constant 0 : i32
    %c0_i32_0 = arith.constant 0 : i32
    %c0_i32_1 = arith.constant 0 : i32
    return %c0_i32, %c0_i32_0 : i32, i32
  }
  func.func @transform_4(%arg0: i32) -> (i32, i32) {
    %c0_i32 = arith.constant 0 : i32
    %c0_i32_0 = arith.constant 0 : i32
    return %arg0, %c0_i32 : i32, i32
  }
}

module attributes {stable_mosaic.version = 11 : i64} {
  func.func @_mha_kernel(%arg0: i32, %arg1: memref<1x8x32xbf16, #tpu.memory_space<vmem>>, %arg2: memref<1x8x32xbf16, #tpu.memory_space<vmem>>, %arg3: memref<1x8x32xbf16, #tpu.memory_space<vmem>>, %arg4: memref<1x8x32xf32, #tpu.memory_space<vmem>>) attributes {dimension_semantics = [#tpu.dimension_semantics<parallel>], iteration_bounds = array<i64: 2>, scalar_prefetch = 0 : i64, scratch_operands = 0 : i64, tpu.core_type = #tpu.core_type<tc>, window_params = [{transform_indices = @transform_0, window_bounds = array<i64: 1, 8, 32>}, {transform_indices = @transform_1, window_bounds = array<i64: 1, 8, 32>}, {transform_indices = @transform_2, window_bounds = array<i64: 1, 8, 32>}, {transform_indices = @transform_3, window_bounds = array<i64: 1, 8, 32>}]} {
    %c0 = arith.constant 0 : index
    %c0_0 = arith.constant 0 : index
    %c0_1 = arith.constant 0 : index
    %0 = vector.load %arg1[%c0, %c0_0, %c0_1] : memref<1x8x32xbf16, #tpu.memory_space<vmem>>, vector<1x8x32xbf16>
    %1 = vector.shape_cast %0 : vector<1x8x32xbf16> to vector<8x32xbf16>
    %c0_2 = arith.constant 0 : index
    %c0_3 = arith.constant 0 : index
    %c0_4 = arith.constant 0 : index
    %2 = vector.load %arg2[%c0_2, %c0_3, %c0_4] : memref<1x8x32xbf16, #tpu.memory_space<vmem>>, vector<1x8x32xbf16>
    %3 = vector.shape_cast %2 : vector<1x8x32xbf16> to vector<8x32xbf16>
    %c0_5 = arith.constant 0 : index
    %c0_6 = arith.constant 0 : index
    %c0_7 = arith.constant 0 : index
    %4 = vector.load %arg3[%c0_5, %c0_6, %c0_7] : memref<1x8x32xbf16, #tpu.memory_space<vmem>>, vector<1x8x32xbf16>
    %5 = vector.shape_cast %4 : vector<1x8x32xbf16> to vector<8x32xbf16>
    %6 = vector.extract_strided_slice %1 {offsets = [0, 0], sizes = [8, 8], strides = [1, 1]} : vector<8x32xbf16> to vector<8x8xbf16>
    %7 = vector.extract_strided_slice %3 {offsets = [0, 0], sizes = [8, 8], strides = [1, 1]} : vector<8x32xbf16> to vector<8x8xbf16>
    %8 = vector.extract_strided_slice %5 {offsets = [0, 0], sizes = [8, 8], strides = [1, 1]} : vector<8x32xbf16> to vector<8x8xbf16>
    %cst = arith.constant dense<0.000000e+00> : vector<8x8xf32>
    %9 = tpu.matmul %6, %7, %cst {dimension_numbers = #tpu.dot_dimension_numbers<[1], [1], [0], [0], [0, 0, 1, 0], [], []>} : vector<8x8xbf16>, vector<8x8xbf16>, vector<8x8xf32> -> vector<8x8xf32>
    %cst_8 = arith.constant 0.353553385 : f32
    %10 = vector.broadcast %cst_8 : f32 to vector<8x8xf32>
    %11 = arith.mulf %9, %10 : vector<8x8xf32>
    %cst_9 = arith.constant dense<0xFF800000> : vector<8xf32>
    %12 = vector.multi_reduction <maximumf>, %11, %cst_9 [1] : vector<8x8xf32> to vector<8xf32>
    %13 = vector.shape_cast %12 : vector<8xf32> to vector<8x1xf32>
    %14 = vector.broadcast %13 : vector<8x1xf32> to vector<8x8xf32>
    %15 = arith.subf %11, %14 : vector<8x8xf32>
    %16 = math.exp %15 : vector<8x8xf32>
    %cst_10 = arith.constant dense<0.000000e+00> : vector<8xf32>
    %17 = vector.multi_reduction <add>, %16, %cst_10 [1] : vector<8x8xf32> to vector<8xf32>
    %18 = vector.shape_cast %17 : vector<8xf32> to vector<8x1xf32>
    %19 = tpu.reciprocal %18 {approx = true} : vector<8x1xf32> -> vector<8x1xf32>
    %20 = vector.broadcast %19 : vector<8x1xf32> to vector<8x8xf32>
    %21 = arith.mulf %16, %20 : vector<8x8xf32>
    %22 = arith.truncf %21 : vector<8x8xf32> to vector<8x8xbf16>
    %cst_11 = arith.constant dense<0.000000e+00> : vector<8x8xf32>
    %23 = tpu.matmul %22, %8, %cst_11 {dimension_numbers = #tpu.dot_dimension_numbers<[1], [0], [0], [1], [0, 0, 1, 1], [], []>} : vector<8x8xbf16>, vector<8x8xbf16>, vector<8x8xf32> -> vector<8x8xf32>
    %24 = vector.extract_strided_slice %1 {offsets = [0, 8], sizes = [8, 8], strides = [1, 1]} : vector<8x32xbf16> to vector<8x8xbf16>
    %25 = vector.extract_strided_slice %3 {offsets = [0, 8], sizes = [8, 8], strides = [1, 1]} : vector<8x32xbf16> to vector<8x8xbf16>
    %26 = vector.extract_strided_slice %5 {offsets = [0, 8], sizes = [8, 8], strides = [1, 1]} : vector<8x32xbf16> to vector<8x8xbf16>
    %cst_12 = arith.constant dense<0.000000e+00> : vector<8x8xf32>
    %27 = tpu.matmul %24, %25, %cst_12 {dimension_numbers = #tpu.dot_dimension_numbers<[1], [1], [0], [0], [0, 0, 1, 0], [], []>} : vector<8x8xbf16>, vector<8x8xbf16>, vector<8x8xf32> -> vector<8x8xf32>
    %cst_13 = arith.constant 0.353553385 : f32
    %28 = vector.broadcast %cst_13 : f32 to vector<8x8xf32>
    %29 = arith.mulf %27, %28 : vector<8x8xf32>
    %cst_14 = arith.constant dense<0xFF800000> : vector<8xf32>
    %30 = vector.multi_reduction <maximumf>, %29, %cst_14 [1] : vector<8x8xf32> to vector<8xf32>
    %31 = vector.shape_cast %30 : vector<8xf32> to vector<8x1xf32>
    %32 = vector.broadcast %31 : vector<8x1xf32> to vector<8x8xf32>
    %33 = arith.subf %29, %32 : vector<8x8xf32>
    %34 = math.exp %33 : vector<8x8xf32>
    %cst_15 = arith.constant dense<0.000000e+00> : vector<8xf32>
    %35 = vector.multi_reduction <add>, %34, %cst_15 [1] : vector<8x8xf32> to vector<8xf32>
    %36 = vector.shape_cast %35 : vector<8xf32> to vector<8x1xf32>
    %37 = tpu.reciprocal %36 {approx = true} : vector<8x1xf32> -> vector<8x1xf32>
    %38 = vector.broadcast %37 : vector<8x1xf32> to vector<8x8xf32>
    %39 = arith.mulf %34, %38 : vector<8x8xf32>
    %40 = arith.truncf %39 : vector<8x8xf32> to vector<8x8xbf16>
    %cst_16 = arith.constant dense<0.000000e+00> : vector<8x8xf32>
    %41 = tpu.matmul %40, %26, %cst_16 {dimension_numbers = #tpu.dot_dimension_numbers<[1], [0], [0], [1], [0, 0, 1, 1], [], []>} : vector<8x8xbf16>, vector<8x8xbf16>, vector<8x8xf32> -> vector<8x8xf32>
    %42 = vector.extract_strided_slice %1 {offsets = [0, 16], sizes = [8, 8], strides = [1, 1]} : vector<8x32xbf16> to vector<8x8xbf16>
    %43 = vector.extract_strided_slice %3 {offsets = [0, 16], sizes = [8, 8], strides = [1, 1]} : vector<8x32xbf16> to vector<8x8xbf16>
    %44 = vector.extract_strided_slice %5 {offsets = [0, 16], sizes = [8, 8], strides = [1, 1]} : vector<8x32xbf16> to vector<8x8xbf16>
    %cst_17 = arith.constant dense<0.000000e+00> : vector<8x8xf32>
    %45 = tpu.matmul %42, %43, %cst_17 {dimension_numbers = #tpu.dot_dimension_numbers<[1], [1], [0], [0], [0, 0, 1, 0], [], []>} : vector<8x8xbf16>, vector<8x8xbf16>, vector<8x8xf32> -> vector<8x8xf32>
    %cst_18 = arith.constant 0.353553385 : f32
    %46 = vector.broadcast %cst_18 : f32 to vector<8x8xf32>
    %47 = arith.mulf %45, %46 : vector<8x8xf32>
    %cst_19 = arith.constant dense<0xFF800000> : vector<8xf32>
    %48 = vector.multi_reduction <maximumf>, %47, %cst_19 [1] : vector<8x8xf32> to vector<8xf32>
    %49 = vector.shape_cast %48 : vector<8xf32> to vector<8x1xf32>
    %50 = vector.broadcast %49 : vector<8x1xf32> to vector<8x8xf32>
    %51 = arith.subf %47, %50 : vector<8x8xf32>
    %52 = math.exp %51 : vector<8x8xf32>
    %cst_20 = arith.constant dense<0.000000e+00> : vector<8xf32>
    %53 = vector.multi_reduction <add>, %52, %cst_20 [1] : vector<8x8xf32> to vector<8xf32>
    %54 = vector.shape_cast %53 : vector<8xf32> to vector<8x1xf32>
    %55 = tpu.reciprocal %54 {approx = true} : vector<8x1xf32> -> vector<8x1xf32>
    %56 = vector.broadcast %55 : vector<8x1xf32> to vector<8x8xf32>
    %57 = arith.mulf %52, %56 : vector<8x8xf32>
    %58 = arith.truncf %57 : vector<8x8xf32> to vector<8x8xbf16>
    %cst_21 = arith.constant dense<0.000000e+00> : vector<8x8xf32>
    %59 = tpu.matmul %58, %44, %cst_21 {dimension_numbers = #tpu.dot_dimension_numbers<[1], [0], [0], [1], [0, 0, 1, 1], [], []>} : vector<8x8xbf16>, vector<8x8xbf16>, vector<8x8xf32> -> vector<8x8xf32>
    %60 = vector.extract_strided_slice %1 {offsets = [0, 24], sizes = [8, 8], strides = [1, 1]} : vector<8x32xbf16> to vector<8x8xbf16>
    %61 = vector.extract_strided_slice %3 {offsets = [0, 24], sizes = [8, 8], strides = [1, 1]} : vector<8x32xbf16> to vector<8x8xbf16>
    %62 = vector.extract_strided_slice %5 {offsets = [0, 24], sizes = [8, 8], strides = [1, 1]} : vector<8x32xbf16> to vector<8x8xbf16>
    %cst_22 = arith.constant dense<0.000000e+00> : vector<8x8xf32>
    %63 = tpu.matmul %60, %61, %cst_22 {dimension_numbers = #tpu.dot_dimension_numbers<[1], [1], [0], [0], [0, 0, 1, 0], [], []>} : vector<8x8xbf16>, vector<8x8xbf16>, vector<8x8xf32> -> vector<8x8xf32>
    %cst_23 = arith.constant 0.353553385 : f32
    %64 = vector.broadcast %cst_23 : f32 to vector<8x8xf32>
    %65 = arith.mulf %63, %64 : vector<8x8xf32>
    %cst_24 = arith.constant dense<0xFF800000> : vector<8xf32>
    %66 = vector.multi_reduction <maximumf>, %65, %cst_24 [1] : vector<8x8xf32> to vector<8xf32>
    %67 = vector.shape_cast %66 : vector<8xf32> to vector<8x1xf32>
    %68 = vector.broadcast %67 : vector<8x1xf32> to vector<8x8xf32>
    %69 = arith.subf %65, %68 : vector<8x8xf32>
    %70 = math.exp %69 : vector<8x8xf32>
    %cst_25 = arith.constant dense<0.000000e+00> : vector<8xf32>
    %71 = vector.multi_reduction <add>, %70, %cst_25 [1] : vector<8x8xf32> to vector<8xf32>
    %72 = vector.shape_cast %71 : vector<8xf32> to vector<8x1xf32>
    %73 = tpu.reciprocal %72 {approx = true} : vector<8x1xf32> -> vector<8x1xf32>
    %74 = vector.broadcast %73 : vector<8x1xf32> to vector<8x8xf32>
    %75 = arith.mulf %70, %74 : vector<8x8xf32>
    %76 = arith.truncf %75 : vector<8x8xf32> to vector<8x8xbf16>
    %cst_26 = arith.constant dense<0.000000e+00> : vector<8x8xf32>
    %77 = tpu.matmul %76, %62, %cst_26 {dimension_numbers = #tpu.dot_dimension_numbers<[1], [0], [0], [1], [0, 0, 1, 1], [], []>} : vector<8x8xbf16>, vector<8x8xbf16>, vector<8x8xf32> -> vector<8x8xf32>
    %78 = tpu.concatenate %23, %41, %59, %77 in 1 : vector<8x8xf32>, vector<8x8xf32>, vector<8x8xf32>, vector<8x8xf32> -> vector<8x32xf32>
    %c0_27 = arith.constant 0 : index
    %c0_28 = arith.constant 0 : index
    %c0_29 = arith.constant 0 : index
    %79 = vector.load %arg4[%c0_27, %c0_28, %c0_29] : memref<1x8x32xf32, #tpu.memory_space<vmem>>, vector<1x8x32xf32>
    %80 = vector.shape_cast %79 : vector<1x8x32xf32> to vector<8x32xf32>
    %81 = vector.shape_cast %78 : vector<8x32xf32> to vector<1x8x32xf32>
    tpu.vector_store %arg4[%c0_27, %c0_28, %c0_29], %81 {strides = array<i32>} : memref<1x8x32xf32, #tpu.memory_space<vmem>>, vector<1x8x32xf32>,
    return
  }
  func.func @transform_0(%arg0: i32) -> (i32, i32, i32) {
    %c0_i32 = arith.constant 0 : i32
    %c0_i32_0 = arith.constant 0 : i32
    %c0_i32_1 = arith.constant 0 : i32
    return %arg0, %c0_i32, %c0_i32_0 : i32, i32, i32
  }
  func.func @transform_1(%arg0: i32) -> (i32, i32, i32) {
    %c0_i32 = arith.constant 0 : i32
    %c0_i32_0 = arith.constant 0 : i32
    %c0_i32_1 = arith.constant 0 : i32
    return %arg0, %c0_i32, %c0_i32_0 : i32, i32, i32
  }
  func.func @transform_2(%arg0: i32) -> (i32, i32, i32) {
    %c0_i32 = arith.constant 0 : i32
    %c0_i32_0 = arith.constant 0 : i32
    %c0_i32_1 = arith.constant 0 : i32
    return %arg0, %c0_i32, %c0_i32_0 : i32, i32, i32
  }
  func.func @transform_3(%arg0: i32) -> (i32, i32, i32) {
    %c0_i32 = arith.constant 0 : i32
    %c0_i32_0 = arith.constant 0 : i32
    %c0_i32_1 = arith.constant 0 : i32
    return %arg0, %c0_i32, %c0_i32_0 : i32, i32, i32
  }
}

module attributes {stable_mosaic.version = 11 : i64} {
  func.func @_linear_kernel(%arg0: i32, %arg1: i32, %arg2: i32, %arg3: memref<16x32xbf16, #tpu.memory_space<vmem>>, %arg4: memref<32x64xbf16, #tpu.memory_space<vmem>>, %arg5: memref<1x64xf32, #tpu.memory_space<vmem>>, %arg6: memref<16x64xf32, #tpu.memory_space<vmem>>, %arg7: memref<16x64xf32, #tpu.memory_space<vmem>>) attributes {dimension_semantics = [#tpu.dimension_semantics<parallel>, #tpu.dimension_semantics<parallel>, #tpu.dimension_semantics<arbitrary>], iteration_bounds = array<i64: 1, 1, 1>, scalar_prefetch = 0 : i64, scratch_operands = 1 : i64, tpu.core_type = #tpu.core_type<tc>, window_params = [{transform_indices = @transform_0, window_bounds = array<i64: 16, 32>}, {transform_indices = @transform_1, window_bounds = array<i64: 32, 64>}, {transform_indices = @transform_2, window_bounds = array<i64: 1, 64>}, {transform_indices = @transform_3, window_bounds = array<i64: 16, 64>}]} {
    %c0_i32 = arith.constant 0 : i32
    %0 = arith.cmpi eq, %arg2, %c0_i32 : i32
    %1 = arith.extui %0 : i1 to i32
    %c0_i32_0 = arith.constant 0 : i32
    %2 = arith.cmpi ne, %1, %c0_i32_0 : i32
    scf.if %2 {
      %cst_10 = arith.constant 0.000000e+00 : f32
      %12 = vector.broadcast %cst_10 : f32 to vector<16x64xf32>
      %c0_11 = arith.constant 0 : index
      %c0_12 = arith.constant 0 : index
      %13 = vector.load %arg7[%c0_11, %c0_12] : memref<16x64xf32, #tpu.memory_space<vmem>>, vector<16x64xf32>
      tpu.vector_store %arg7[%c0_11, %c0_12], %12 {strides = array<i32>} : memref<16x64xf32, #tpu.memory_space<vmem>>, vector<16x64xf32>,
    } else {
    }
    %c0 = arith.constant 0 : index
    %c0_1 = arith.constant 0 : index
    %3 = vector.load %arg7[%c0, %c0_1] : memref<16x64xf32, #tpu.memory_space<vmem>>, vector<16x64xf32>
    %c0_2 = arith.constant 0 : index
    %c0_3 = arith.constant 0 : index
    %4 = vector.load %arg3[%c0_2, %c0_3] : memref<16x32xbf16, #tpu.memory_space<vmem>>, vector<16x32xbf16>
    %c0_4 = arith.constant 0 : index
    %c0_5 = arith.constant 0 : index
    %5 = vector.load %arg4[%c0_4, %c0_5] : memref<32x64xbf16, #tpu.memory_space<vmem>>, vector<32x64xbf16>
    %cst = arith.constant dense<0.000000e+00> : vector<16x64xf32>
    %6 = tpu.matmul %4, %5, %cst {dimension_numbers = #tpu.dot_dimension_numbers<[1], [0], [0], [1], [0, 0, 1, 1], [], []>} : vector<16x32xbf16>, vector<32x64xbf16>, vector<16x64xf32> -> vector<16x64xf32>
    %7 = arith.addf %3, %6 : vector<16x64xf32>
    %c0_6 = arith.constant 0 : index
    %c0_7 = arith.constant 0 : index
    %8 = vector.load %arg7[%c0_6, %c0_7] : memref<16x64xf32, #tpu.memory_space<vmem>>, vector<16x64xf32>
    tpu.vector_store %arg7[%c0_6, %c0_7], %7 {strides = array<i32>} : memref<16x64xf32, #tpu.memory_space<vmem>>, vector<16x64xf32>,
    %c0_i32_8 = arith.constant 0 : i32
    %9 = arith.cmpi eq, %arg2, %c0_i32_8 : i32
    %10 = arith.extui %9 : i1 to i32
    %c0_i32_9 = arith.constant 0 : i32
    %11 = arith.cmpi ne, %10, %c0_i32_9 : i32
    scf.if %11 {
      %c0_10 = arith.constant 0 : index
      %c0_11 = arith.constant 0 : index
      %12 = vector.load %arg7[%c0_10, %c0_11] : memref<16x64xf32, #tpu.memory_space<vmem>>, vector<16x64xf32>
      %c0_12 = arith.constant 0 : index
      %c0_13 = arith.constant 0 : index
      %13 = vector.load %arg5[%c0_12, %c0_13] : memref<1x64xf32, #tpu.memory_space<vmem>>, vector<1x64xf32>
      %14 = vector.broadcast %13 : vector<1x64xf32> to vector<16x64xf32>
      %15 = arith.addf %12, %14 : vector<16x64xf32>
      %c0_14 = arith.constant 0 : index
      %c0_15 = arith.constant 0 : index
      %16 = vector.load %arg6[%c0_14, %c0_15] : memref<16x64xf32, #tpu.memory_space<vmem>>, vector<16x64xf32>
      tpu.vector_store %arg6[%c0_14, %c0_15], %15 {strides = array<i32>} : memref<16x64xf32, #tpu.memory_space<vmem>>, vector<16x64xf32>,
    } else {
    }
    return
  }
  func.func @transform_0(%arg0: i32, %arg1: i32, %arg2: i32) -> (i32, i32) {
    %c0_i32 = arith.constant 0 : i32
    return %arg0, %arg2 : i32, i32
  }
  func.func @transform_1(%arg0: i32, %arg1: i32, %arg2: i32) -> (i32, i32) {
    %c0_i32 = arith.constant 0 : i32
    return %arg2, %arg1 : i32, i32
  }
  func.func @transform_2(%arg0: i32, %arg1: i32, %arg2: i32) -> (i32, i32) {
    %c0_i32 = arith.constant 0 : i32
    %c0_i32_0 = arith.constant 0 : i32
    return %c0_i32, %arg1 : i32, i32
  }
  func.func @transform_3(%arg0: i32, %arg1: i32, %arg2: i32) -> (i32, i32) {
    %c0_i32 = arith.constant 0 : i32
    return %arg0, %arg1 : i32, i32
  }
}

module attributes {stable_mosaic.version = 11 : i64} {
  func.func @_mha_kernel(%arg0: i32, %arg1: memref<1x8x32xbf16, #tpu.memory_space<vmem>>, %arg2: memref<1x8x32xbf16, #tpu.memory_space<vmem>>, %arg3: memref<1x8x32xbf16, #tpu.memory_space<vmem>>, %arg4: memref<1x8x32xf32, #tpu.memory_space<vmem>>) attributes {dimension_semantics = [#tpu.dimension_semantics<parallel>], iteration_bounds = array<i64: 2>, scalar_prefetch = 0 : i64, scratch_operands = 0 : i64, tpu.core_type = #tpu.core_type<tc>, window_params = [{transform_indices = @transform_0, window_bounds = array<i64: 1, 8, 32>}, {transform_indices = @transform_1, window_bounds = array<i64: 1, 8, 32>}, {transform_indices = @transform_2, window_bounds = array<i64: 1, 8, 32>}, {transform_indices = @transform_3, window_bounds = array<i64: 1, 8, 32>}]} {
    %c0 = arith.constant 0 : index
    %c0_0 = arith.constant 0 : index
    %c0_1 = arith.constant 0 : index
    %0 = vector.load %arg1[%c0, %c0_0, %c0_1] : memref<1x8x32xbf16, #tpu.memory_space<vmem>>, vector<1x8x32xbf16>
    %1 = vector.shape_cast %0 : vector<1x8x32xbf16> to vector<8x32xbf16>
    %c0_2 = arith.constant 0 : index
    %c0_3 = arith.constant 0 : index
    %c0_4 = arith.constant 0 : index
    %2 = vector.load %arg2[%c0_2, %c0_3, %c0_4] : memref<1x8x32xbf16, #tpu.memory_space<vmem>>, vector<1x8x32xbf16>
    %3 = vector.shape_cast %2 : vector<1x8x32xbf16> to vector<8x32xbf16>
    %c0_5 = arith.constant 0 : index
    %c0_6 = arith.constant 0 : index
    %c0_7 = arith.constant 0 : index
    %4 = vector.load %arg3[%c0_5, %c0_6, %c0_7] : memref<1x8x32xbf16, #tpu.memory_space<vmem>>, vector<1x8x32xbf16>
    %5 = vector.shape_cast %4 : vector<1x8x32xbf16> to vector<8x32xbf16>
    %6 = tpu.iota {dimensions = array<i32: 0>} : vector<8x8xi32>
    %7 = tpu.iota {dimensions = array<i32: 1>} : vector<8x8xi32>
    %8 = arith.cmpi sgt, %7, %6 : vector<8x8xi32>
    %cst = arith.constant -1.000000e+30 : f32
    %cst_8 = arith.constant 0.000000e+00 : f32
    %9 = vector.broadcast %cst : f32 to vector<8x8xf32>
    %10 = vector.broadcast %cst_8 : f32 to vector<8x8xf32>
    %11 = arith.select %8, %9, %10 : vector<8x8xi1>, vector<8x8xf32>
    %12 = vector.extract_strided_slice %1 {offsets = [0, 0], sizes = [8, 8], strides = [1, 1]} : vector<8x32xbf16> to vector<8x8xbf16>
    %13 = vector.extract_strided_slice %3 {offsets = [0, 0], sizes = [8, 8], strides = [1, 1]} : vector<8x32xbf16> to vector<8x8xbf16>
    %14 = vector.extract_strided_slice %5 {offsets = [0, 0], sizes = [8, 8], strides = [1, 1]} : vector<8x32xbf16> to vector<8x8xbf16>
    %cst_9 = arith.constant dense<0.000000e+00> : vector<8x8xf32>
    %15 = tpu.matmul %12, %13, %cst_9 {dimension_numbers = #tpu.dot_dimension_numbers<[1], [1], [0], [0], [0, 0, 1, 0], [], []>} : vector<8x8xbf16>, vector<8x8xbf16>, vector<8x8xf32> -> vector<8x8xf32>
    %cst_10 = arith.constant 0.353553385 : f32
    %16 = vector.broadcast %cst_10 : f32 to vector<8x8xf32>
    %17 = arith.mulf %15, %16 : vector<8x8xf32>
    %18 = arith.addf %17, %11 : vector<8x8xf32>
    %cst_11 = arith.constant dense<0xFF800000> : vector<8xf32>
    %19 = vector.multi_reduction <maximumf>, %18, %cst_11 [1] : vector<8x8xf32> to vector<8xf32>
    %20 = vector.shape_cast %19 : vector<8xf32> to vector<8x1xf32>
    %21 = vector.broadcast %20 : vector<8x1xf32> to vector<8x8xf32>
    %22 = arith.subf %18, %21 : vector<8x8xf32>
    %23 = math.exp %22 : vector<8x8xf32>
    %cst_12 = arith.constant dense<0.000000e+00> : vector<8xf32>
    %24 = vector.multi_reduction <add>, %23, %cst_12 [1] : vector<8x8xf32> to vector<8xf32>
    %25 = vector.shape_cast %24 : vector<8xf32> to vector<8x1xf32>
    %26 = tpu.reciprocal %25 {approx = true} : vector<8x1xf32> -> vector<8x1xf32>
    %27 = vector.broadcast %26 : vector<8x1xf32> to vector<8x8xf32>
    %28 = arith.mulf %23, %27 : vector<8x8xf32>
    %29 = arith.truncf %28 : vector<8x8xf32> to vector<8x8xbf16>
    %cst_13 = arith.constant dense<0.000000e+00> : vector<8x8xf32>
    %30 = tpu.matmul %29, %14, %cst_13 {dimension_numbers = #tpu.dot_dimension_numbers<[1], [0], [0], [1], [0, 0, 1, 1], [], []>} : vector<8x8xbf16>, vector<8x8xbf16>, vector<8x8xf32> -> vector<8x8xf32>
    %31 = vector.extract_strided_slice %1 {offsets = [0, 8], sizes = [8, 8], strides = [1, 1]} : vector<8x32xbf16> to vector<8x8xbf16>
    %32 = vector.extract_strided_slice %3 {offsets = [0, 8], sizes = [8, 8], strides = [1, 1]} : vector<8x32xbf16> to vector<8x8xbf16>
    %33 = vector.extract_strided_slice %5 {offsets = [0, 8], sizes = [8, 8], strides = [1, 1]} : vector<8x32xbf16> to vector<8x8xbf16>
    %cst_14 = arith.constant dense<0.000000e+00> : vector<8x8xf32>
    %34 = tpu.matmul %31, %32, %cst_14 {dimension_numbers = #tpu.dot_dimension_numbers<[1], [1], [0], [0], [0, 0, 1, 0], [], []>} : vector<8x8xbf16>, vector<8x8xbf16>, vector<8x8xf32> -> vector<8x8xf32>
    %cst_15 = arith.constant 0.353553385 : f32
    %35 = vector.broadcast %cst_15 : f32 to vector<8x8xf32>
    %36 = arith.mulf %34, %35 : vector<8x8xf32>
    %37 = arith.addf %36, %11 : vector<8x8xf32>
    %cst_16 = arith.constant dense<0xFF800000> : vector<8xf32>
    %38 = vector.multi_reduction <maximumf>, %37, %cst_16 [1] : vector<8x8xf32> to vector<8xf32>
    %39 = vector.shape_cast %38 : vector<8xf32> to vector<8x1xf32>
    %40 = vector.broadcast %39 : vector<8x1xf32> to vector<8x8xf32>
    %41 = arith.subf %37, %40 : vector<8x8xf32>
    %42 = math.exp %41 : vector<8x8xf32>
    %cst_17 = arith.constant dense<0.000000e+00> : vector<8xf32>
    %43 = vector.multi_reduction <add>, %42, %cst_17 [1] : vector<8x8xf32> to vector<8xf32>
    %44 = vector.shape_cast %43 : vector<8xf32> to vector<8x1xf32>
    %45 = tpu.reciprocal %44 {approx = true} : vector<8x1xf32> -> vector<8x1xf32>
    %46 = vector.broadcast %45 : vector<8x1xf32> to vector<8x8xf32>
    %47 = arith.mulf %42, %46 : vector<8x8xf32>
    %48 = arith.truncf %47 : vector<8x8xf32> to vector<8x8xbf16>
    %cst_18 = arith.constant dense<0.000000e+00> : vector<8x8xf32>
    %49 = tpu.matmul %48, %33, %cst_18 {dimension_numbers = #tpu.dot_dimension_numbers<[1], [0], [0], [1], [0, 0, 1, 1], [], []>} : vector<8x8xbf16>, vector<8x8xbf16>, vector<8x8xf32> -> vector<8x8xf32>
    %50 = vector.extract_strided_slice %1 {offsets = [0, 16], sizes = [8, 8], strides = [1, 1]} : vector<8x32xbf16> to vector<8x8xbf16>
    %51 = vector.extract_strided_slice %3 {offsets = [0, 16], sizes = [8, 8], strides = [1, 1]} : vector<8x32xbf16> to vector<8x8xbf16>
    %52 = vector.extract_strided_slice %5 {offsets = [0, 16], sizes = [8, 8], strides = [1, 1]} : vector<8x32xbf16> to vector<8x8xbf16>
    %cst_19 = arith.constant dense<0.000000e+00> : vector<8x8xf32>
    %53 = tpu.matmul %50, %51, %cst_19 {dimension_numbers = #tpu.dot_dimension_numbers<[1], [1], [0], [0], [0, 0, 1, 0], [], []>} : vector<8x8xbf16>, vector<8x8xbf16>, vector<8x8xf32> -> vector<8x8xf32>
    %cst_20 = arith.constant 0.353553385 : f32
    %54 = vector.broadcast %cst_20 : f32 to vector<8x8xf32>
    %55 = arith.mulf %53, %54 : vector<8x8xf32>
    %56 = arith.addf %55, %11 : vector<8x8xf32>
    %cst_21 = arith.constant dense<0xFF800000> : vector<8xf32>
    %57 = vector.multi_reduction <maximumf>, %56, %cst_21 [1] : vector<8x8xf32> to vector<8xf32>
    %58 = vector.shape_cast %57 : vector<8xf32> to vector<8x1xf32>
    %59 = vector.broadcast %58 : vector<8x1xf32> to vector<8x8xf32>
    %60 = arith.subf %56, %59 : vector<8x8xf32>
    %61 = math.exp %60 : vector<8x8xf32>
    %cst_22 = arith.constant dense<0.000000e+00> : vector<8xf32>
    %62 = vector.multi_reduction <add>, %61, %cst_22 [1] : vector<8x8xf32> to vector<8xf32>
    %63 = vector.shape_cast %62 : vector<8xf32> to vector<8x1xf32>
    %64 = tpu.reciprocal %63 {approx = true} : vector<8x1xf32> -> vector<8x1xf32>
    %65 = vector.broadcast %64 : vector<8x1xf32> to vector<8x8xf32>
    %66 = arith.mulf %61, %65 : vector<8x8xf32>
    %67 = arith.truncf %66 : vector<8x8xf32> to vector<8x8xbf16>
    %cst_23 = arith.constant dense<0.000000e+00> : vector<8x8xf32>
    %68 = tpu.matmul %67, %52, %cst_23 {dimension_numbers = #tpu.dot_dimension_numbers<[1], [0], [0], [1], [0, 0, 1, 1], [], []>} : vector<8x8xbf16>, vector<8x8xbf16>, vector<8x8xf32> -> vector<8x8xf32>
    %69 = vector.extract_strided_slice %1 {offsets = [0, 24], sizes = [8, 8], strides = [1, 1]} : vector<8x32xbf16> to vector<8x8xbf16>
    %70 = vector.extract_strided_slice %3 {offsets = [0, 24], sizes = [8, 8], strides = [1, 1]} : vector<8x32xbf16> to vector<8x8xbf16>
    %71 = vector.extract_strided_slice %5 {offsets = [0, 24], sizes = [8, 8], strides = [1, 1]} : vector<8x32xbf16> to vector<8x8xbf16>
    %cst_24 = arith.constant dense<0.000000e+00> : vector<8x8xf32>
    %72 = tpu.matmul %69, %70, %cst_24 {dimension_numbers = #tpu.dot_dimension_numbers<[1], [1], [0], [0], [0, 0, 1, 0], [], []>} : vector<8x8xbf16>, vector<8x8xbf16>, vector<8x8xf32> -> vector<8x8xf32>
    %cst_25 = arith.constant 0.353553385 : f32
    %73 = vector.broadcast %cst_25 : f32 to vector<8x8xf32>
    %74 = arith.mulf %72, %73 : vector<8x8xf32>
    %75 = arith.addf %74, %11 : vector<8x8xf32>
    %cst_26 = arith.constant dense<0xFF800000> : vector<8xf32>
    %76 = vector.multi_reduction <maximumf>, %75, %cst_26 [1] : vector<8x8xf32> to vector<8xf32>
    %77 = vector.shape_cast %76 : vector<8xf32> to vector<8x1xf32>
    %78 = vector.broadcast %77 : vector<8x1xf32> to vector<8x8xf32>
    %79 = arith.subf %75, %78 : vector<8x8xf32>
    %80 = math.exp %79 : vector<8x8xf32>
    %cst_27 = arith.constant dense<0.000000e+00> : vector<8xf32>
    %81 = vector.multi_reduction <add>, %80, %cst_27 [1] : vector<8x8xf32> to vector<8xf32>
    %82 = vector.shape_cast %81 : vector<8xf32> to vector<8x1xf32>
    %83 = tpu.reciprocal %82 {approx = true} : vector<8x1xf32> -> vector<8x1xf32>
    %84 = vector.broadcast %83 : vector<8x1xf32> to vector<8x8xf32>
    %85 = arith.mulf %80, %84 : vector<8x8xf32>
    %86 = arith.truncf %85 : vector<8x8xf32> to vector<8x8xbf16>
    %cst_28 = arith.constant dense<0.000000e+00> : vector<8x8xf32>
    %87 = tpu.matmul %86, %71, %cst_28 {dimension_numbers = #tpu.dot_dimension_numbers<[1], [0], [0], [1], [0, 0, 1, 1], [], []>} : vector<8x8xbf16>, vector<8x8xbf16>, vector<8x8xf32> -> vector<8x8xf32>
    %88 = tpu.concatenate %30, %49, %68, %87 in 1 : vector<8x8xf32>, vector<8x8xf32>, vector<8x8xf32>, vector<8x8xf32> -> vector<8x32xf32>
    %c0_29 = arith.constant 0 : index
    %c0_30 = arith.constant 0 : index
    %c0_31 = arith.constant 0 : index
    %89 = vector.load %arg4[%c0_29, %c0_30, %c0_31] : memref<1x8x32xf32, #tpu.memory_space<vmem>>, vector<1x8x32xf32>
    %90 = vector.shape_cast %89 : vector<1x8x32xf32> to vector<8x32xf32>
    %91 = vector.shape_cast %88 : vector<8x32xf32> to vector<1x8x32xf32>
    tpu.vector_store %arg4[%c0_29, %c0_30, %c0_31], %91 {strides = array<i32>} : memref<1x8x32xf32, #tpu.memory_space<vmem>>, vector<1x8x32xf32>,
    return
  }
  func.func @transform_0(%arg0: i32) -> (i32, i32, i32) {
    %c0_i32 = arith.constant 0 : i32
    %c0_i32_0 = arith.constant 0 : i32
    %c0_i32_1 = arith.constant 0 : i32
    return %arg0, %c0_i32, %c0_i32_0 : i32, i32, i32
  }
  func.func @transform_1(%arg0: i32) -> (i32, i32, i32) {
    %c0_i32 = arith.constant 0 : i32
    %c0_i32_0 = arith.constant 0 : i32
    %c0_i32_1 = arith.constant 0 : i32
    return %arg0, %c0_i32, %c0_i32_0 : i32, i32, i32
  }
  func.func @transform_2(%arg0: i32) -> (i32, i32, i32) {
    %c0_i32 = arith.constant 0 : i32
    %c0_i32_0 = arith.constant 0 : i32
    %c0_i32_1 = arith.constant 0 : i32
    return %arg0, %c0_i32, %c0_i32_0 : i32, i32, i32
  }
  func.func @transform_3(%arg0: i32) -> (i32, i32, i32) {
    %c0_i32 = arith.constant 0 : i32
    %c0_i32_0 = arith.constant 0 : i32
    %c0_i32_1 = arith.constant 0 : i32
    return %arg0, %c0_i32, %c0_i32_0 : i32, i32, i32
  }
}

module attributes {stable_mosaic.version = 11 : i64} {
  func.func @_linear_kernel(%arg0: i32, %arg1: i32, %arg2: i32, %arg3: memref<16x32xbf16, #tpu.memory_space<vmem>>, %arg4: memref<32x32xbf16, #tpu.memory_space<vmem>>, %arg5: memref<1x32xf32, #tpu.memory_space<vmem>>, %arg6: memref<16x32xf32, #tpu.memory_space<vmem>>, %arg7: memref<16x32xf32, #tpu.memory_space<vmem>>) attributes {dimension_semantics = [#tpu.dimension_semantics<parallel>, #tpu.dimension_semantics<parallel>, #tpu.dimension_semantics<arbitrary>], iteration_bounds = array<i64: 1, 1, 1>, scalar_prefetch = 0 : i64, scratch_operands = 1 : i64, tpu.core_type = #tpu.core_type<tc>, window_params = [{transform_indices = @transform_0, window_bounds = array<i64: 16, 32>}, {transform_indices = @transform_1, window_bounds = array<i64: 32, 32>}, {transform_indices = @transform_2, window_bounds = array<i64: 1, 32>}, {transform_indices = @transform_3, window_bounds = array<i64: 16, 32>}]} {
    %c0_i32 = arith.constant 0 : i32
    %0 = arith.cmpi eq, %arg2, %c0_i32 : i32
    %1 = arith.extui %0 : i1 to i32
    %c0_i32_0 = arith.constant 0 : i32
    %2 = arith.cmpi ne, %1, %c0_i32_0 : i32
    scf.if %2 {
      %cst_10 = arith.constant 0.000000e+00 : f32
      %12 = vector.broadcast %cst_10 : f32 to vector<16x32xf32>
      %c0_11 = arith.constant 0 : index
      %c0_12 = arith.constant 0 : index
      %13 = vector.load %arg7[%c0_11, %c0_12] : memref<16x32xf32, #tpu.memory_space<vmem>>, vector<16x32xf32>
      tpu.vector_store %arg7[%c0_11, %c0_12], %12 {strides = array<i32>} : memref<16x32xf32, #tpu.memory_space<vmem>>, vector<16x32xf32>,
    } else {
    }
    %c0 = arith.constant 0 : index
    %c0_1 = arith.constant 0 : index
    %3 = vector.load %arg7[%c0, %c0_1] : memref<16x32xf32, #tpu.memory_space<vmem>>, vector<16x32xf32>
    %c0_2 = arith.constant 0 : index
    %c0_3 = arith.constant 0 : index
    %4 = vector.load %arg3[%c0_2, %c0_3] : memref<16x32xbf16, #tpu.memory_space<vmem>>, vector<16x32xbf16>
    %c0_4 = arith.constant 0 : index
    %c0_5 = arith.constant 0 : index
    %5 = vector.load %arg4[%c0_4, %c0_5] : memref<32x32xbf16, #tpu.memory_space<vmem>>, vector<32x32xbf16>
    %cst = arith.constant dense<0.000000e+00> : vector<16x32xf32>
    %6 = tpu.matmul %4, %5, %cst {dimension_numbers = #tpu.dot_dimension_numbers<[1], [0], [0], [1], [0, 0, 1, 1], [], []>} : vector<16x32xbf16>, vector<32x32xbf16>, vector<16x32xf32> -> vector<16x32xf32>
    %7 = arith.addf %3, %6 : vector<16x32xf32>
    %c0_6 = arith.constant 0 : index
    %c0_7 = arith.constant 0 : index
    %8 = vector.load %arg7[%c0_6, %c0_7] : memref<16x32xf32, #tpu.memory_space<vmem>>, vector<16x32xf32>
    tpu.vector_store %arg7[%c0_6, %c0_7], %7 {strides = array<i32>} : memref<16x32xf32, #tpu.memory_space<vmem>>, vector<16x32xf32>,
    %c0_i32_8 = arith.constant 0 : i32
    %9 = arith.cmpi eq, %arg2, %c0_i32_8 : i32
    %10 = arith.extui %9 : i1 to i32
    %c0_i32_9 = arith.constant 0 : i32
    %11 = arith.cmpi ne, %10, %c0_i32_9 : i32
    scf.if %11 {
      %c0_10 = arith.constant 0 : index
      %c0_11 = arith.constant 0 : index
      %12 = vector.load %arg7[%c0_10, %c0_11] : memref<16x32xf32, #tpu.memory_space<vmem>>, vector<16x32xf32>
      %c0_12 = arith.constant 0 : index
      %c0_13 = arith.constant 0 : index
      %13 = vector.load %arg5[%c0_12, %c0_13] : memref<1x32xf32, #tpu.memory_space<vmem>>, vector<1x32xf32>
      %14 = vector.broadcast %13 : vector<1x32xf32> to vector<16x32xf32>
      %15 = arith.addf %12, %14 : vector<16x32xf32>
      %c0_14 = arith.constant 0 : index
      %c0_15 = arith.constant 0 : index
      %16 = vector.load %arg6[%c0_14, %c0_15] : memref<16x32xf32, #tpu.memory_space<vmem>>, vector<16x32xf32>
      tpu.vector_store %arg6[%c0_14, %c0_15], %15 {strides = array<i32>} : memref<16x32xf32, #tpu.memory_space<vmem>>, vector<16x32xf32>,
    } else {
    }
    return
  }
  func.func @transform_0(%arg0: i32, %arg1: i32, %arg2: i32) -> (i32, i32) {
    %c0_i32 = arith.constant 0 : i32
    return %arg0, %arg2 : i32, i32
  }
  func.func @transform_1(%arg0: i32, %arg1: i32, %arg2: i32) -> (i32, i32) {
    %c0_i32 = arith.constant 0 : i32
    return %arg2, %arg1 : i32, i32
  }
  func.func @transform_2(%arg0: i32, %arg1: i32, %arg2: i32) -> (i32, i32) {
    %c0_i32 = arith.constant 0 : i32
    %c0_i32_0 = arith.constant 0 : i32
    return %c0_i32, %arg1 : i32, i32
  }
  func.func @transform_3(%arg0: i32, %arg1: i32, %arg2: i32) -> (i32, i32) {
    %c0_i32 = arith.constant 0 : i32
    return %arg0, %arg1 : i32, i32
  }
}

module attributes {stable_mosaic.version = 11 : i64} {
  func.func @_ffn_kernel(%arg0: i32, %arg1: i32, %arg2: memref<16x32xbf16, #tpu.memory_space<vmem>>, %arg3: memref<32x128xbf16, #tpu.memory_space<vmem>>, %arg4: memref<1x128xf32, #tpu.memory_space<vmem>>, %arg5: memref<128x32xbf16, #tpu.memory_space<vmem>>, %arg6: memref<1x32xf32, #tpu.memory_space<vmem>>, %arg7: memref<16x32xf32, #tpu.memory_space<vmem>>, %arg8: memref<16x32xf32, #tpu.memory_space<vmem>>) attributes {dimension_semantics = [#tpu.dimension_semantics<parallel>, #tpu.dimension_semantics<arbitrary>], iteration_bounds = array<i64: 1, 1>, scalar_prefetch = 0 : i64, scratch_operands = 1 : i64, tpu.core_type = #tpu.core_type<tc>, window_params = [{transform_indices = @transform_0, window_bounds = array<i64: 16, 32>}, {transform_indices = @transform_1, window_bounds = array<i64: 32, 128>}, {transform_indices = @transform_2, window_bounds = array<i64: 1, 128>}, {transform_indices = @transform_3, window_bounds = array<i64: 128, 32>}, {pipeline_mode = #tpu.pipeline_mode<synchronous>, transform_indices = @transform_4, window_bounds = array<i64: 1, 32>}, {transform_indices = @transform_5, window_bounds = array<i64: 16, 32>}]} {
    %c0_i32 = arith.constant 0 : i32
    %0 = arith.cmpi eq, %arg1, %c0_i32 : i32
    %1 = arith.extui %0 : i1 to i32
    %c0_i32_0 = arith.constant 0 : i32
    %2 = arith.cmpi ne, %1, %c0_i32_0 : i32
    scf.if %2 {
      %cst_16 = arith.constant 0.000000e+00 : f32
      %20 = vector.broadcast %cst_16 : f32 to vector<16x32xf32>
      %c0_17 = arith.constant 0 : index
      %c0_18 = arith.constant 0 : index
      %21 = vector.load %arg8[%c0_17, %c0_18] : memref<16x32xf32, #tpu.memory_space<vmem>>, vector<16x32xf32>
      tpu.vector_store %arg8[%c0_17, %c0_18], %20 {strides = array<i32>} : memref<16x32xf32, #tpu.memory_space<vmem>>, vector<16x32xf32>,
    } else {
    }
    %c0 = arith.constant 0 : index
    %c0_1 = arith.constant 0 : index
    %3 = vector.load %arg2[%c0, %c0_1] : memref<16x32xbf16, #tpu.memory_space<vmem>>, vector<16x32xbf16>
    %c0_2 = arith.constant 0 : index
    %c0_3 = arith.constant 0 : index
    %4 = vector.load %arg3[%c0_2, %c0_3] : memref<32x128xbf16, #tpu.memory_space<vmem>>, vector<32x128xbf16>
    %cst = arith.constant dense<0.000000e+00> : vector<16x128xf32>
    %5 = tpu.matmul %3, %4, %cst {dimension_numbers = #tpu.dot_dimension_numbers<[1], [0], [0], [1], [0, 0, 1, 1], [], []>} : vector<16x32xbf16>, vector<32x128xbf16>, vector<16x128xf32> -> vector<16x128xf32>
    %c0_4 = arith.constant 0 : index
    %c0_5 = arith.constant 0 : index
    %6 = vector.load %arg4[%c0_4, %c0_5] : memref<1x128xf32, #tpu.memory_space<vmem>>, vector<1x128xf32>
    %7 = vector.broadcast %6 : vector<1x128xf32> to vector<16x128xf32>
    %8 = arith.addf %5, %7 : vector<16x128xf32>
    %cst_6 = arith.constant 0.000000e+00 : f32
    %9 = vector.broadcast %cst_6 : f32 to vector<16x128xf32>
    %10 = arith.maximumf %8, %9 : vector<16x128xf32>
    %11 = arith.truncf %10 : vector<16x128xf32> to vector<16x128xbf16>
    %c0_7 = arith.constant 0 : index
    %c0_8 = arith.constant 0 : index
    %12 = vector.load %arg8[%c0_7, %c0_8] : memref<16x32xf32, #tpu.memory_space<vmem>>, vector<16x32xf32>
    %c0_9 = arith.constant 0 : index
    %c0_10 = arith.constant 0 : index
    %13 = vector.load %arg5[%c0_9, %c0_10] : memref<128x32xbf16, #tpu.memory_space<vmem>>, vector<128x32xbf16>
    %cst_11 = arith.constant dense<0.000000e+00> : vector<16x32xf32>
    %14 = tpu.matmul %11, %13, %cst_11 {dimension_numbers = #tpu.dot_dimension_numbers<[1], [0], [0], [1], [0, 0, 1, 1], [], []>} : vector<16x128xbf16>, vector<128x32xbf16>, vector<16x32xf32> -> vector<16x32xf32>
    %15 = arith.addf %12, %14 : vector<16x32xf32>
    %c0_12 = arith.constant 0 : index
    %c0_13 = arith.constant 0 : index
    %16 = vector.load %arg8[%c0_12, %c0_13] : memref<16x32xf32, #tpu.memory_space<vmem>>, vector<16x32xf32>
    tpu.vector_store %arg8[%c0_12, %c0_13], %15 {strides = array<i32>} : memref<16x32xf32, #tpu.memory_space<vmem>>, vector<16x32xf32>,
    %c0_i32_14 = arith.constant 0 : i32
    %17 = arith.cmpi eq, %arg1, %c0_i32_14 : i32
    %18 = arith.extui %17 : i1 to i32
    %c0_i32_15 = arith.constant 0 : i32
    %19 = arith.cmpi ne, %18, %c0_i32_15 : i32
    scf.if %19 {
      %c0_16 = arith.constant 0 : index
      %c0_17 = arith.constant 0 : index
      %20 = vector.load %arg8[%c0_16, %c0_17] : memref<16x32xf32, #tpu.memory_space<vmem>>, vector<16x32xf32>
      %c0_18 = arith.constant 0 : index
      %c0_19 = arith.constant 0 : index
      %21 = vector.load %arg6[%c0_18, %c0_19] : memref<1x32xf32, #tpu.memory_space<vmem>>, vector<1x32xf32>
      %22 = vector.broadcast %21 : vector<1x32xf32> to vector<16x32xf32>
      %23 = arith.addf %20, %22 : vector<16x32xf32>
      %c0_20 = arith.constant 0 : index
      %c0_21 = arith.constant 0 : index
      %24 = vector.load %arg7[%c0_20, %c0_21] : memref<16x32xf32, #tpu.memory_space<vmem>>, vector<16x32xf32>
      tpu.vector_store %arg7[%c0_20, %c0_21], %23 {strides = array<i32>} : memref<16x32xf32, #tpu.memory_space<vmem>>, vector<16x32xf32>,
    } else {
    }
    return
  }
  func.func @transform_0(%arg0: i32, %arg1: i32) -> (i32, i32) {
    %c0_i32 = arith.constant 0 : i32
    %c0_i32_0 = arith.constant 0 : i32
    return %arg0, %c0_i32 : i32, i32
  }
  func.func @transform_1(%arg0: i32, %arg1: i32) -> (i32, i32) {
    %c0_i32 = arith.constant 0 : i32
    %c0_i32_0 = arith.constant 0 : i32
    return %c0_i32, %arg1 : i32, i32
  }
  func.func @transform_2(%arg0: i32, %arg1: i32) -> (i32, i32) {
    %c0_i32 = arith.constant 0 : i32
    %c0_i32_0 = arith.constant 0 : i32
    return %c0_i32, %arg1 : i32, i32
  }
  func.func @transform_3(%arg0: i32, %arg1: i32) -> (i32, i32) {
    %c0_i32 = arith.constant 0 : i32
    %c0_i32_0 = arith.constant 0 : i32
    return %arg1, %c0_i32 : i32, i32
  }
  func.func @transform_4(%arg0: i32, %arg1: i32) -> (i32, i32) {
    %c0_i32 = arith.constant 0 : i32
    %c0_i32_0 = arith.constant 0 : i32
    %c0_i32_1 = arith.constant 0 : i32
    return %c0_i32, %c0_i32_0 : i32, i32
  }
  func.func @transform_5(%arg0: i32, %arg1: i32) -> (i32, i32) {
    %c0_i32 = arith.constant 0 : i32
    %c0_i32_0 = arith.constant 0 : i32
    return %arg0, %c0_i32 : i32, i32
  }
}

</mosaic_0001>

<bundles_post_ra>
// kernel: text_module_forward.37
= control target key start
LH: loop header
LB: loop body
LE: loop exit
PB: predicated region body
PF: predicated region fallthrough
CT: control target
= control target key end

     0   :  { %vm19_vm0 = vcmask 261120   ;;  %v137_v0 = vmov 0.0   ;;  %vm138_vm1 = vmmov 0   ;;  %s184_s1 = inlined_call_operand.vmem [shape: bf16[32,32], index: 1, kind: input, shape index: {}]   ;;  %s185_s0 = inlined_call_operand.vmem [shape: bf16[16,32], index: 0, kind: input, shape index: {}]   ;;  %s186_s2 = inlined_call_operand.vmem [shape: f32[1,32], index: 2, kind: input, shape index: {}]   ;;  %s187_s3 = inlined_call_operand.vmem [shape: f32[16,32], index: 3, kind: output, shape index: {}]  }
   0x1   :  { %124 = vmatprep.subr.bf16.mxu0 %v137_v0  ;;  %v134_v1 = vld [vmem:[%s184_s1] sm:$0xff]   ;;  %128 = vmatprep.mubr.msk.bf16.mxu0 %vm138_vm1, %v137_v0  ;;  %20 = vst.msk [vmem:[#allocation2] sm:$0xff] %vm19_vm0, %v137_v0  ;;  %21 = vst.msk [vmem:[#allocation2 + $0x8] sm:$0xff] %vm19_vm0, %v137_v0  ;;  %v135_v2 = vld [vmem:[%s184_s1 + $0x8] sm:$0xff]  }
   0x2   :  { %125 = vmatpush3.bf16.msra.mxu0 %v134_v1  ;;  %v136_v3 = vld [vmem:[%s185_s0] sm:$0xff]  }
   0x3   :  { %126 = vmatprep.subr.bf16.mxu0 %v137_v0  ;;  %v120_v12 = vld [vmem:[%s186_s2] ss:$0 sm:$0xff] }
   0x6   :  { %127 = vmatpush3.bf16.msra.mxu0 %v135_v2 }
   0x8   :  { %v22_v4 = vld [vmem:[#allocation2] sm:$0xff]  ;;  %v23_v6 = vld [vmem:[#allocation2 + $0x8] sm:$0xff] }
   0x9   :  { %129 = vmatmul.mubr.msk.bf16.vlgmr.msra.gmra.mrb[0].mxu0 %vm19_vm0, %v136_v3 }
  0xdc   :  { %v85_v5 = vpop.f32.mrb[0].mxu0 }
  0xdd   :  { %v92_v7 = vadd.f32 %v85_v5, %v22_v4  ;;  %v130_v8 = vpop.f32.mrb[1].mxu0 }
  0xde   :  { %v88_v9 = vpop.f32.mrb[2].mxu0 }
  0xdf   :  { %94 = vst.msk [vmem:[#allocation2] sm:$0xff] %vm19_vm0, %v92_v7  ;;  %v93_v10 = vadd.f32 %v88_v9, %v23_v6  ;;  %v131_v11 = vpop.f32.mrb[3].mxu0 }
  0xe1   :  { %95 = vst.msk [vmem:[#allocation2 + $0x8] sm:$0xff] %vm19_vm0, %v93_v10 }
  0xe6   :  { %v99_v13 = vld [vmem:[#allocation2] sm:$0xff] }
  0xe7   :  { %v108_v14 = vadd.f32 %v120_v12, %v99_v13 }
  0xe8   :  { %v100_v15 = vld [vmem:[#allocation2 + $0x8] sm:$0xff] }
  0xe9   :  { %110 = vst.msk [vmem:[%s187_s3] sm:$0xff] %vm19_vm0, %v108_v14  ;;  %v109_v16 = vadd.f32 %v120_v12, %v100_v15 }
  0xeb   :  { %111 = vst.msk [vmem:[%s187_s3 + $0x8] sm:$0xff] %vm19_vm0, %v109_v16 }

// kernel: text_module_forward.38
= control target key start
LH: loop header
LB: loop body
LE: loop exit
PB: predicated region body
PF: predicated region fallthrough
CT: control target
= control target key end

     0   :  { %vm23_vm0 = vcmask 261120   ;;  %s136_s0 = inlined_call_operand.vmem [shape: f32[16,32], index: 0, kind: input, shape index: {}]   ;;  %s137_s1 = inlined_call_operand.vmem [shape: f32[16,32], index: 1, kind: input, shape index: {}]   ;;  %s138_s2 = inlined_call_operand.vmem [shape: f32[1,32], index: 2, kind: input, shape index: {}]   ;;  %s139_s3 = inlined_call_operand.vmem [shape: f32[1,32], index: 3, kind: input, shape index: {}]   ;;  %s140_s4 = inlined_call_operand.vmem [shape: f32[16,32], index: 4, kind: output, shape index: {}]  }
   0x1   :  { %v17_v0 = vld [vmem:[%s136_s0] sm:$0xff]  ;;  %v18_v2 = vld [vmem:[%s136_s0 + $0x8] sm:$0xff] }
   0x2   :  { %v19_v1 = vld [vmem:[%s137_s1] sm:$0xff]  ;;  %v20_v4 = vld [vmem:[%s137_s1 + $0x8] sm:$0xff] }
   0x3   :  { %v21_v3 = vadd.f32 %v19_v1, %v17_v0  ;;  %v22_v5 = vadd.f32 %v20_v4, %v18_v2  ;;  %v75_v25 = vld [vmem:[%s138_s2] ss:$0 sm:$0xff] }
   0x4   :  { %v76_v27 = vld [vmem:[%s139_s3] ss:$0 sm:$0xff] }
   0x5   :  { %v24_v6 = vsel %vm23_vm0, %v21_v3, 0.0  ;;  %v27_v7 = vsel %vm23_vm0, %v22_v5, 0.0 }
   0x6   :  { %25 = vadd.xlane.f32.xlu0 %v24_v6 }
   0xa   :  { %28 = vadd.xlane.f32.xlu0 %v27_v7 }
  0x93   :  { %v26_v8 = vpop.xlane.xlu0 %25 }
  0x94   :  { %v31_v9 = vmul.f32 0.03125, %v26_v8 }
  0x96   :  { %v33_v10 = vsub.f32 %v21_v3, %v31_v9 }
  0x97   :  { %v29_v11 = vpop.xlane.xlu0 %28 }
  0x98   :  { %v32_v12 = vmul.f32 0.03125, %v29_v11  ;;  %v35_v13 = vmul.f32 %v33_v10, %v33_v10 }
  0x9a   :  { %v34_v14 = vsub.f32 %v22_v5, %v32_v12  ;;  %v37_v15 = vsel %vm23_vm0, %v35_v13, 0.0 }
  0x9b   :  { %38 = vadd.xlane.f32.xlu1 %v37_v15 }
  0x9c   :  { %v36_v16 = vmul.f32 %v34_v14, %v34_v14 }
  0x9e   :  { %v40_v17 = vsel %vm23_vm0, %v36_v16, 0.0 }
  0x9f   :  { %41 = vadd.xlane.f32.xlu1 %v40_v17 }
 0x128   :  { %v39_v18 = vpop.xlane.xlu1 %38 }
 0x129   :  { %v43_v19 = vmul.f32 0.03125, %v39_v18 }
 0x12b   :  { %v45_v20 = vadd.f32 1e-05, %v43_v19 }
 0x12c   :  { %v42_v21 = vpop.xlane.xlu1 %41 }
 0x12d   :  { %77 = vrsqrt.f32 %v45_v20  ;;  %v44_v22 = vmul.f32 0.03125, %v42_v21 }
 0x12f   :  { %v46_v23 = vadd.f32 1e-05, %v44_v22 }
 0x131   :  { %79 = vrsqrt.f32 %v46_v23 }
 0x137   :  { %v78_v24 = vpop.eup %77 }
 0x138   :  { %v49_v26 = vmul.f32 %v78_v24, %v33_v10 }
 0x13a   :  { %v58_v28 = vmul.f32 %v75_v25, %v49_v26 }
 0x13b   :  { %v80_v29 = vpop.eup %79 }
 0x13c   :  { %v67_v30 = vadd.f32 %v76_v27, %v58_v28  ;;  %v50_v31 = vmul.f32 %v80_v29, %v34_v14 }
 0x13e   :  { %69 = vst.msk [vmem:[%s140_s4] sm:$0xff] %vm23_vm0, %v67_v30  ;;  %v59_v32 = vmul.f32 %v75_v25, %v50_v31 }
 0x140   :  { %v68_v33 = vadd.f32 %v76_v27, %v59_v32 }
 0x142   :  { %70 = vst.msk [vmem:[%s140_s4 + $0x8] sm:$0xff] %vm23_vm0, %v68_v33 }

// kernel: text_module_forward.35
= control target key start
LH: loop header
LB: loop body
LE: loop exit
PB: predicated region body
PF: predicated region fallthrough
CT: control target
= control target key end

     0   :  { %vm19_vm0 = vcmask 785408   ;;  %v138_v0 = vmov 0.0   ;;  %vm139_vm1 = vmmov 0   ;;  %vm47_vm2 = vcmask 261120   ;;  %s184_s1 = inlined_call_operand.vmem [shape: bf16[32,96], index: 1, kind: input, shape index: {}]   ;;  %s185_s0 = inlined_call_operand.vmem [shape: bf16[16,32], index: 0, kind: input, shape index: {}]   ;;  %s186_s2 = inlined_call_operand.vmem [shape: f32[1,96], index: 2, kind: input, shape index: {}]   ;;  %s187_s3 = inlined_call_operand.vmem [shape: f32[16,96], index: 3, kind: output, shape index: {}]  }
   0x1   :  { %125 = vmatprep.subr.bf16.mxu0 %v138_v0  ;;  %v135_v1 = vld [vmem:[%s184_s1] sm:$0xff]   ;;  %129 = vmatprep.mubr.msk.bf16.mxu0 %vm139_vm1, %v138_v0  ;;  %20 = vst.msk [vmem:[#allocation2] sm:$0xff] %vm19_vm0, %v138_v0  ;;  %21 = vst.msk [vmem:[#allocation2 + $0x8] sm:$0xff] %vm19_vm0, %v138_v0  ;;  %v136_v2 = vld [vmem:[%s184_s1 + $0x8] sm:$0xff]  }
   0x2   :  { %126 = vmatpush3.bf16.msra.mxu0 %v135_v1  ;;  %v137_v3 = vld [vmem:[%s185_s0] sm:$0xff]  }
   0x3   :  { %127 = vmatprep.subr.bf16.mxu0 %v138_v0  ;;  %v121_v12 = vld [vmem:[%s186_s2] ss:$0 sm:$0xff] }
   0x6   :  { %128 = vmatpush3.bf16.msra.mxu0 %v136_v2 }
   0x8   :  { %v22_v4 = vld [vmem:[#allocation2] sm:$0xff]  ;;  %v23_v6 = vld [vmem:[#allocation2 + $0x8] sm:$0xff] }
   0x9   :  { %130 = vmatmul.mubr.msk.bf16.vlgmr.msra.gmra.mrb[0].mxu0 %vm47_vm2, %v137_v3 }
  0xdc   :  { %v85_v5 = vpop.f32.mrb[0].mxu0 }
  0xdd   :  { %v92_v7 = vadd.f32 %v85_v5, %v22_v4  ;;  %v131_v8 = vpop.f32.mrb[1].mxu0 }
  0xde   :  { %v88_v9 = vpop.f32.mrb[2].mxu0 }
  0xdf   :  { %95 = vst.msk [vmem:[#allocation2] sm:$0xff] %vm19_vm0, %v92_v7  ;;  %v93_v10 = vadd.f32 %v88_v9, %v23_v6  ;;  %v132_v11 = vpop.f32.mrb[3].mxu0 }
  0xe1   :  { %96 = vst.msk [vmem:[#allocation2 + $0x8] sm:$0xff] %vm19_vm0, %v93_v10 }
  0xe6   :  { %v100_v13 = vld [vmem:[#allocation2] sm:$0xff] }
  0xe7   :  { %v109_v14 = vadd.f32 %v121_v12, %v100_v13 }
  0xe8   :  { %v101_v15 = vld [vmem:[#allocation2 + $0x8] sm:$0xff] }
  0xe9   :  { %111 = vst.msk [vmem:[%s187_s3] sm:$0xff] %vm19_vm0, %v109_v14  ;;  %v110_v16 = vadd.f32 %v121_v12, %v101_v15 }
  0xeb   :  { %112 = vst.msk [vmem:[%s187_s3 + $0x8] sm:$0xff] %vm19_vm0, %v110_v16 }

// kernel: text_module_forward.36
= control target key start
LH: loop header
LB: loop body
LE: loop exit
PB: predicated region body
PF: predicated region fallthrough
CT: control target
= control target key end

     0   :  { %s906_s12 = smov 0   ;;  %s1004_s0 = inlined_call_operand.vmem [shape: bf16[2,8,32], index: 0, kind: input, shape index: {}]   ;;  %s1005_s1 = inlined_call_operand.vmem [shape: bf16[2,8,32], index: 1, kind: input, shape index: {}]   ;;  %s1006_s2 = inlined_call_operand.vmem [shape: bf16[2,8,32], index: 2, kind: input, shape index: {}]   ;;  %s1007_s3 = inlined_call_operand.vmem [shape: f32[2,8,32], index: 3, kind: output, shape index: {}]  }
   0x1 LB: > { %s749_s13 = sadd.s32 4294967295, %s876_s12   ;;  %p753_p0 = scmp.ge.s32.totalorder %s876_s12, 1  ;;  %s876_s12 = sphi %s906_s12, %s13_s12  }
   0x2   : > { %p154_p1 = scmp.lt.s32.totalorder %s876_s12, 3 }
   0x4   : > { %p155_p2 = pnand %p753_p0, %p154_p1 }
   0x5   : > { %p184_p3 = scmp.lt.s32.totalorder (!%p155_p2), %s749_s13, 1  ;;  %v878_v0 = vmov (!%p155_p2), 0.0   ;;  %vm879_vm0 = vmmov (!%p155_p2), 0   ;;  %vm204_vm1 = vcmask (!%p155_p2), 64512   ;;  %s880_s21 = smov (!%p155_p2), 120   ;;  %vm267_vm2 = vcmask (!%p155_p2), 1043456  }
   0x6   : > { %158 = sbr.rel (%p155_p2) target bundleno = 1475 (0x5c3), region = 32  ;;  %787 = vmatprep.subr.bf16.mxu0 (!%p155_p2), %v878_v0  ;;  %789 = vmatprep.mubr.msk.bf16.mxu0 (!%p155_p2), %vm879_vm0, %v878_v0  ;;  %s881_s22 = smov (!%p155_p2), 112   ;;  %vm666_vm3 = vcmask (!%p155_p2), 130048   ;;  %vm668_vm4 = vcmask (!%p155_p2), 195584   ;;  %vm670_vm5 = vcmask (!%p155_p2), 261120  }
   0x7   : > { %793 = vmatprep.subr.bf16.mxu1 (!%p155_p2), %v878_v0  ;;  %795 = vmatprep.mubr.msk.bf16.mxu1 (!%p155_p2), %vm879_vm0, %v878_v0  ;;  %s882_s23 = smov (!%p155_p2), 104   ;;  %s883_s27 = smov (!%p155_p2), 8  }
   0x8   : > { %s884_s28 = smov (!%p155_p2), 16   ;;  %s885_s29 = smov (!%p155_p2), 24  }
   0xd   : > { %s1009_s13 = smov (!%p184_p3, %s749_s13), 1 }
   0xe   : > { %s923_s14 = sshll.u32 %s1009_s13, 2  ;;  %s757_s30 = sshll.u32 %s1009_s13, 3 }
   0xf   : > { %s191_s17 = scalar_lea.vmem %s1005_s1, %s923_s14  ;;  %s187_s20 = scalar_lea.vmem %s1004_s0, %s923_s14 }
  0x10   : > { %v202_v1 = vld [vmem:[%s191_s17] sm:$0xf]  ;;  %s195_s26 = scalar_lea.vmem %s1006_s2, %s923_s14  ;;  %s199_s6 = scalar_lea.vmem %s1007_s3, %s757_s30 }
  0x11   : > { %v209_v2 = vsel %vm204_vm1, %v202_v1, 0  ;;  %v201_v3 = vld [vmem:[%s187_s20] sm:$0xf]  ;;  %v761_v10 = vcombine.low %v202_v1, %v202_v1 }
  0x12   : > { %788 = vmatpush3.bf16.xpose.msra.mxu0 %v209_v2  ;;  %v760_v11 = vcombine.low %v201_v3, %v201_v3  ;;  %v949_v17 = vld [vmem:[%s195_s26] sm:$0xf] }
  0x13   : > { %805 = vmatprep.subr.bf16.mxu0 %v878_v0  ;;  %319 = vrot.lane.b32.xlu1 %v761_v10, %s880_s21  ;;  %v269_v18 = vsel %vm267_vm2, %v949_v17, 0  ;;  %v763_v1 = vcombine.low %v949_v17, %v949_v17 }
  0x14   : > { %794 = vmatpush3.bf16.msra.mxu1 %v269_v18 }
  0x15   : > { %799 = vmatprep.subr.bf16.mxu1 %v878_v0 }
  0x17   : > { %314 = vrot.lane.b32.xlu1 %v760_v11, %s880_s21 }
  0x19   : > { %790 = vmatmul.mubr.msk.bf16.vlgmr.msra.gmra.mrb[0].mxu0 %vm204_vm1, %v201_v3 }
  0x1a   : > { %807 = vmatprep.mubr.msk.bf16.mxu0 %vm879_vm0, %v878_v0 }
  0x1b   : > { %431 = vrot.lane.b32.xlu1 %v760_v11, %s881_s22 }
  0x1f   : > { %544 = vrot.lane.b32.xlu1 %v761_v10, %s882_s23 }
  0x23   : > { %542 = vrot.lane.b32.xlu1 %v760_v11, %s882_s23 }
  0x85   : > { %v320_v21 = vpop.permute.xlu1 %319 }
  0x86   : > { %v325_v23 = vsel %vm204_vm1, %v320_v21, 0 }
  0x89   : > { %v315_v25 = vpop.permute.xlu1 %314 }
  0x8d   : > { %v432_v27 = vpop.permute.xlu1 %431 }
  0x91   : > { %v545_v29 = vpop.permute.xlu1 %544 }
  0x92   : > { %v550_v30 = vsel %vm204_vm1, %v545_v29, 0 }
  0x95   : > { %v543_v31 = vpop.permute.xlu1 %542 }
  0xec   : > { %v245_v4 = vpop.f32.mrb[0].mxu0 }
  0xed   : > { %v251_v5 = vmul.f32 0.35355338, %v245_v4  ;;  %v791_v6 = vpop.f32.mrb[1].mxu0 }
  0xee   : > { %v248_v7 = vpop.f32.mrb[2].mxu0 }
  0xef   : > { %v792_v8 = vpop.f32.mrb[3].mxu0  ;;  %v252_v9 = vsel %vm204_vm1, %v251_v5, -inf }
  0xf0   : > { %253 = vmax.xlane.f32.xlu0 %v252_v9 }
 0x17d   : > { %v254_v12 = vpop.xlane.xlu0 %253 }
 0x17e   : > { %v255_v13 = vsub.f32 %v251_v5, %v254_v12 }
 0x180   : > { %v256_v14 = vmul.f32 1.442695, %v255_v13 }
 0x182   : > { %854 = vpow2.f32 %v256_v14 }
 0x18c   : > { %v855_v15 = vpop.eup %854 }
 0x18d   : > { %v258_v16 = vsel %vm204_vm1, %v855_v15, 0.0 }
 0x18e   : > { %259 = vadd.xlane.f32.xlu0 %v258_v16 }
 0x1a4   : > { %433 = vrot.lane.b32.xlu0 %v761_v10, %s881_s22 }
 0x21b   : > { %v260_v19 = vpop.xlane.xlu0 %259 }
 0x21c   : > { %856 = vrcp.f32 %v260_v19 }
 0x21f   : > { %v434_v26 = vpop.permute.xlu0 %433 }
 0x220   : > { %v439_v28 = vsel %vm204_vm1, %v434_v26, 0 }
 0x226   : > { %v857_v20 = vpop.eup %856 }
 0x227   : > { %v262_v22 = vmul.f32 %v857_v20, %v855_v15 }
 0x229   : > { %v263_v24 = vpack.c.bf16 %v262_v22, %v262_v22 }
 0x22b   : > { %796 = vmatmul.mubr.msk.bf16.vlgmr.msra.gmra.mrb[0].mxu1 %vm204_vm1, %v263_v24 }
 0x22c   : > { %800 = vmatpush3.bf16.xpose.msra.mxu1 %v325_v23  ;;  %801 = vmatprep.mubr.msk.bf16.mxu1 %vm879_vm0, %v878_v0 }
 0x22d   : > { %811 = vmatprep.subr.bf16.mxu1 %v878_v0 }
 0x233   : > { %802 = vmatmul.mubr.msk.bf16.vlgmr.msra.gmra.mrb[4].mxu1 %vm204_vm1, %v315_v25 }
 0x234   : > { %812 = vmatpush3.bf16.xpose.msra.mxu1 %v439_v28  ;;  %813 = vmatprep.mubr.msk.bf16.mxu1 %vm879_vm0, %v878_v0 }
 0x235   : > { %823 = vmatprep.subr.bf16.mxu1 %v878_v0 }
 0x23b   : > { %814 = vmatmul.mubr.msk.bf16.vlgmr.msra.gmra.mrb[8].mxu1 %vm204_vm1, %v432_v27 }
 0x23c   : > { %824 = vmatpush3.bf16.xpose.msra.mxu1 %v550_v30  ;;  %825 = vmatprep.mubr.msk.bf16.mxu1 %vm879_vm0, %v878_v0 }
 0x243   : > { %826 = vmatmul.mubr.msk.bf16.vlgmr.msra.gmra.mrb[12].mxu1 %vm204_vm1, %v543_v31 }
 0x2fe   : > { %v970_v32 = vpop.f32.mrb[0].mxu1 }
 0x2ff   : > { %v797_v33 = vpop.f32.mrb[1].mxu1 }
 0x300   : > { %v308_v34 = vpop.f32.mrb[2].mxu1 }
 0x301   : > { %v798_v35 = vpop.f32.mrb[3].mxu1 }
 0x306   : > { %v361_v36 = vpop.f32.mrb[4].mxu1 }
 0x307   : > { %v367_v37 = vmul.f32 0.35355338, %v361_v36  ;;  %v803_v38 = vpop.f32.mrb[5].mxu1 }
 0x308   : > { %v364_v39 = vpop.f32.mrb[6].mxu1 }
 0x309   : > { %v804_v40 = vpop.f32.mrb[7].mxu1  ;;  %v368_v41 = vsel %vm204_vm1, %v367_v37, -inf }
 0x30a   : > { %369 = vmax.xlane.f32.xlu1 %v368_v41 }
 0x30e   : > { %v475_v42 = vpop.f32.mrb[8].mxu1 }
 0x30f   : > { %v481_v43 = vmul.f32 0.35355338, %v475_v42  ;;  %v815_v44 = vpop.f32.mrb[9].mxu1 }
 0x310   : > { %v478_v45 = vpop.f32.mrb[10].mxu1 }
 0x311   : > { %v482_v46 = vsel %vm204_vm1, %v481_v43, -inf  ;;  %v816_v47 = vpop.f32.mrb[11].mxu1 }
 0x312   : > { %483 = vmax.xlane.f32.xlu0 %v482_v46 }
 0x316   : > { %v586_v48 = vpop.f32.mrb[12].mxu1 }
 0x317   : > { %v592_v49 = vmul.f32 0.35355338, %v586_v48  ;;  %v827_v50 = vpop.f32.mrb[13].mxu1 }
 0x318   : > { %v589_v51 = vpop.f32.mrb[14].mxu1 }
 0x319   : > { %v593_v52 = vsel %vm204_vm1, %v592_v49, -inf  ;;  %v828_v53 = vpop.f32.mrb[15].mxu1 }
 0x31a   : > { %594 = vmax.xlane.f32.xlu1 %v593_v52 }
 0x397   : > { %v370_v54 = vpop.xlane.xlu1 %369 }
 0x398   : > { %v371_v55 = vsub.f32 %v367_v37, %v370_v54 }
 0x39a   : > { %v372_v56 = vmul.f32 1.442695, %v371_v55 }
 0x39c   : > { %858 = vpow2.f32 %v372_v56 }
 0x39f   : > { %v484_v57 = vpop.xlane.xlu0 %483 }
 0x3a0   : > { %v485_v58 = vsub.f32 %v481_v43, %v484_v57 }
 0x3a2   : > { %v486_v59 = vmul.f32 1.442695, %v485_v58 }
 0x3a4   : > { %860 = vpow2.f32 %v486_v59 }
 0x3a6   : > { %v859_v60 = vpop.eup %858 }
 0x3a7   : > { %v374_v61 = vsel %vm204_vm1, %v859_v60, 0.0  ;;  %v595_v2 = vpop.xlane.xlu1 %594 }
 0x3a8   : > { %375 = vadd.xlane.f32.xlu1 %v374_v61  ;;  %v596_v3 = vsub.f32 %v592_v49, %v595_v2 }
 0x3aa   : > { %v597_v4 = vmul.f32 1.442695, %v596_v3 }
 0x3ac   : > { %862 = vpow2.f32 %v597_v4 }
 0x3ae   : > { %v861_v62 = vpop.eup %860 }
 0x3af   : > { %v488_v63 = vsel %vm204_vm1, %v861_v62, 0.0 }
 0x3b0   : > { %489 = vadd.xlane.f32.xlu0 %v488_v63 }
 0x3b6   : > { %v863_v5 = vpop.eup %862 }
 0x3b7   : > { %v599_v6 = vsel %vm204_vm1, %v863_v5, 0.0 }
 0x3b9   : > { %494 = vrot.lane.b32.xlu1 %v763_v1, %s881_s22 }
 0x3c6   : > { %383 = vrot.lane.b32.xlu0 %v763_v1, %s880_s21 }
 0x3dd   : > { %600 = vadd.xlane.f32.xlu1 %v599_v6 }
 0x3ee   : > { %605 = vrot.lane.b32.xlu1 %v763_v1, %s882_s23 }
 0x435   : > { %v376_v7 = vpop.xlane.xlu1 %375 }
 0x436   : > { %864 = vrcp.f32 %v376_v7 }
 0x439   : > { %v495_v13 = vpop.permute.xlu1 %494 }
 0x43a   : > { %v500_v15 = vsel %vm267_vm2, %v495_v13, 0 }
 0x43d   : > { %v490_v8 = vpop.xlane.xlu0 %489 }
 0x43e   : > { %866 = vrcp.f32 %v490_v8 }
 0x440   : > { %v865_v9 = vpop.eup %864 }
 0x441   : > { %v378_v10 = vmul.f32 %v865_v9, %v859_v60  ;;  %v384_v11 = vpop.permute.xlu0 %383 }
 0x442   : > { %v389_v12 = vsel %vm267_vm2, %v384_v11, 0 }
 0x443   : > { %806 = vmatpush3.bf16.msra.mxu0 %v389_v12  ;;  %v379_v14 = vpack.c.bf16 %v378_v10, %v378_v10 }
 0x444   : > { %817 = vmatprep.subr.bf16.mxu0 %v878_v0 }
 0x446   : > { %808 = vmatmul.mubr.msk.bf16.vlgmr.msra.gmra.mrb[4].mxu0 %vm204_vm1, %v379_v14 }
 0x447   : > { %818 = vmatpush3.bf16.msra.mxu0 %v500_v15  ;;  %819 = vmatprep.mubr.msk.bf16.mxu0 %vm879_vm0, %v878_v0 }
 0x448   : > { %v867_v16 = vpop.eup %866  ;;  %829 = vmatprep.subr.bf16.mxu0 %v878_v0 }
 0x449   : > { %v492_v17 = vmul.f32 %v867_v16, %v861_v62 }
 0x44b   : > { %v493_v18 = vpack.c.bf16 %v492_v17, %v492_v17 }
 0x44e   : > { %820 = vmatmul.mubr.msk.bf16.vlgmr.msra.gmra.mrb[8].mxu0 %vm204_vm1, %v493_v18 }
 0x44f   : > { %831 = vmatprep.mubr.msk.bf16.mxu0 %vm879_vm0, %v878_v0 }
 0x46a   : > { %v601_v19 = vpop.xlane.xlu1 %600 }
 0x46b   : > { %868 = vrcp.f32 %v601_v19 }
 0x46e   : > { %v606_v20 = vpop.permute.xlu1 %605 }
 0x46f   : > { %v611_v21 = vsel %vm267_vm2, %v606_v20, 0 }
 0x470   : > { %830 = vmatpush3.bf16.msra.mxu0 %v611_v21 }
 0x475   : > { %v869_v22 = vpop.eup %868 }
 0x476   : > { %v603_v23 = vmul.f32 %v869_v22, %v863_v5 }
 0x478   : > { %v604_v24 = vpack.c.bf16 %v603_v23, %v603_v23 }
 0x47a   : > { %832 = vmatmul.mubr.msk.bf16.vlgmr.msra.gmra.mrb[12].mxu0 %vm204_vm1, %v604_v24 }
 0x519   : > { %v425_v25 = vpop.f32.mrb[4].mxu0 }
 0x51a   : > { %654 = vrot.lane.b32.xlu0 %v425_v25, %s883_s27  ;;  %v809_v26 = vpop.f32.mrb[5].mxu0 }
 0x51b   : > { %v428_v27 = vpop.f32.mrb[6].mxu0 }
 0x51c   : > { %v810_v28 = vpop.f32.mrb[7].mxu0 }
 0x521   : > { %v536_v29 = vpop.f32.mrb[8].mxu0 }
 0x522   : > { %658 = vrot.lane.b32.xlu1 %v536_v29, %s884_s28  ;;  %v821_v0 = vpop.f32.mrb[9].mxu0 }
 0x523   : > { %v539_v30 = vpop.f32.mrb[10].mxu0 }
 0x524   : > { %v822_v31 = vpop.f32.mrb[11].mxu0 }
 0x54d   : > { %v647_v33 = vpop.f32.mrb[12].mxu0 }
 0x54e   : > { %662 = vrot.lane.b32.xlu0 %v647_v33, %s885_s29  ;;  %v833_v34 = vpop.f32.mrb[13].mxu0 }
 0x54f   : > { %v650_v35 = vpop.f32.mrb[14].mxu0 }
 0x550   : > { %v834_v36 = vpop.f32.mrb[15].mxu0 }
 0x58c   : > { %v655_v37 = vpop.permute.xlu0 %654 }
 0x58d   : > { %v665_v39 = vsel %vm204_vm1, %v970_v32, %v655_v37 }
 0x594   : > { %v659_v38 = vpop.permute.xlu1 %658 }
 0x595   : > { %v667_v40 = vsel %vm666_vm3, %v665_v39, %v659_v38 }
 0x5c0   : > { %v663_v41 = vpop.permute.xlu0 %662 }
 0x5c1   : > { %v669_v42 = vsel %vm668_vm4, %v667_v40, %v663_v41 }
 0x5c2   : > { %671 = vst.msk [vmem:[%s199_s6] sm:$0xff] %vm670_vm5, %v669_v42 }
 0x5c3 PF: > { %s13_s12 = sadd.s32 1, %s876_s12  }
 0x5c4   : > { %p10_p4 = scmp.ge.s32.totalorder %s13_s12, 4  }
 0x5c6   :  { %12 = sbr.rel (!%p10_p4) target bundleno = 1 (0x1), region = 68 }

// kernel: text_module_forward.52
= control target key start
LH: loop header
LB: loop body
LE: loop exit
PB: predicated region body
PF: predicated region fallthrough
CT: control target
= control target key end

     0   :  { %vm19_vm0 = vcmask 523264   ;;  %v138_v0 = vmov 0.0   ;;  %vm139_vm1 = vmmov 0   ;;  %vm47_vm2 = vcmask 261120   ;;  %s184_s1 = inlined_call_operand.vmem [shape: bf16[32,64], index: 1, kind: input, shape index: {}]   ;;  %s185_s0 = inlined_call_operand.vmem [shape: bf16[16,32], index: 0, kind: input, shape index: {}]   ;;  %s186_s2 = inlined_call_operand.vmem [shape: f32[1,64], index: 2, kind: input, shape index: {}]   ;;  %s187_s3 = inlined_call_operand.vmem [shape: f32[16,64], index: 3, kind: output, shape index: {}]  }
   0x1   :  { %125 = vmatprep.subr.bf16.mxu0 %v138_v0  ;;  %v135_v1 = vld [vmem:[%s184_s1] sm:$0xff]   ;;  %129 = vmatprep.mubr.msk.bf16.mxu0 %vm139_vm1, %v138_v0  ;;  %20 = vst.msk [vmem:[#allocation2] sm:$0xff] %vm19_vm0, %v138_v0  ;;  %21 = vst.msk [vmem:[#allocation2 + $0x8] sm:$0xff] %vm19_vm0, %v138_v0  ;;  %v136_v2 = vld [vmem:[%s184_s1 + $0x8] sm:$0xff]  }
   0x2   :  { %126 = vmatpush3.bf16.msra.mxu0 %v135_v1  ;;  %v137_v3 = vld [vmem:[%s185_s0] sm:$0xff]  }
   0x3   :  { %127 = vmatprep.subr.bf16.mxu0 %v138_v0  ;;  %v121_v12 = vld [vmem:[%s186_s2] ss:$0 sm:$0xff] }
   0x6   :  { %128 = vmatpush3.bf16.msra.mxu0 %v136_v2 }
   0x8   :  { %v22_v4 = vld [vmem:[#allocation2] sm:$0xff]  ;;  %v23_v6 = vld [vmem:[#allocation2 + $0x8] sm:$0xff] }
   0x9   :  { %130 = vmatmul.mubr.msk.bf16.vlgmr.msra.gmra.mrb[0].mxu0 %vm47_vm2, %v137_v3 }
  0xdc   :  { %v85_v5 = vpop.f32.mrb[0].mxu0 }
  0xdd   :  { %v92_v7 = vadd.f32 %v85_v5, %v22_v4  ;;  %v131_v8 = vpop.f32.mrb[1].mxu0 }
  0xde   :  { %v88_v9 = vpop.f32.mrb[2].mxu0 }
  0xdf   :  { %95 = vst.msk [vmem:[#allocation2] sm:$0xff] %vm19_vm0, %v92_v7  ;;  %v93_v10 = vadd.f32 %v88_v9, %v23_v6  ;;  %v132_v11 = vpop.f32.mrb[3].mxu0 }
  0xe1   :  { %96 = vst.msk [vmem:[#allocation2 + $0x8] sm:$0xff] %vm19_vm0, %v93_v10 }
  0xe6   :  { %v100_v13 = vld [vmem:[#allocation2] sm:$0xff] }
  0xe7   :  { %v109_v14 = vadd.f32 %v121_v12, %v100_v13 }
  0xe8   :  { %v101_v15 = vld [vmem:[#allocation2 + $0x8] sm:$0xff] }
  0xe9   :  { %111 = vst.msk [vmem:[%s187_s3] sm:$0xff] %vm19_vm0, %v109_v14  ;;  %v110_v16 = vadd.f32 %v121_v12, %v101_v15 }
  0xeb   :  { %112 = vst.msk [vmem:[%s187_s3 + $0x8] sm:$0xff] %vm19_vm0, %v110_v16 }

// kernel: text_module_forward.69
= control target key start
LH: loop header
LB: loop body
LE: loop exit
PB: predicated region body
PF: predicated region fallthrough
CT: control target
= control target key end

     0   :  { %v177_v1 = vmov 0.0   ;;  %vm178_vm0 = vmmov 0   ;;  %vm20_vm1 = vcmask 261120   ;;  %s233_s0 = inlined_call_operand.vmem [shape: bf16[16,32], index: 0, kind: input, shape index: {}]   ;;  %s234_s1 = inlined_call_operand.vmem [shape: bf16[32,32], index: 1, kind: input, shape index: {}]   ;;  %s235_s2 = inlined_call_operand.vmem [shape: f32[1,32], index: 2, kind: input, shape index: {}]   ;;  %s236_s3 = inlined_call_operand.hbm [shape: f32[16,32], index: 3, kind: output, shape index: {}]  }
   0x1   :  { %v150_v0 = vld [vmem:[%s234_s1] sm:$0xff]   ;;  %137 = vmatprep.subr.bf16.mxu0 %v177_v1  ;;  %v151_v2 = vld [vmem:[%s234_s1 + $0x8] sm:$0xff]   ;;  %141 = vmatprep.mubr.msk.bf16.mxu0 %vm178_vm0, %v177_v1  ;;  %21 = vst.msk [vmem:[#allocation2] sm:$0xff] %vm20_vm1, %v177_v1  ;;  %22 = vst.msk [vmem:[#allocation2 + $0x8] sm:$0xff] %vm20_vm1, %v177_v1 }
   0x2   :  { %138 = vmatpush3.bf16.msra.mxu0 %v150_v0 }
   0x3   :  { %139 = vmatprep.subr.bf16.mxu0 %v177_v1 }
   0x4   :  { %8 = vsyncpa [#allocation4], 0  ;;  %v152_v3 = vld [vmem:[%s233_s0] sm:$0xff]   ;;  %s179_s0 = smov [#allocation3]  }
   0x5   :  { %v133_v12 = vld [vmem:[%s235_s2] ss:$0 sm:$0xff]  ;;  %s118_s19 = sshll.u32 %s179_s0, 4  ;;  %s119_s19 = int_to_ptr.vmem [resolvable:$true] %s118_s19 }
   0x6   :  { %140 = vmatpush3.bf16.msra.mxu0 %v151_v2  ;;  %s153_s20 = scalar_lea.vmem %s119_s19, 256  ;;  %p158_p1 = scmp.lt.s32.totalorder %s119_s19, %s119_s19 }
   0x7   :  { %p154_p0 = scmp.ne.s32.totalorder %s119_s19, %s153_s20  ;;  %p159_p2 = scmp.lt.s32.totalorder %s153_s20, %s153_s20 }
   0x8   :  { %v23_v4 = vld [vmem:[#allocation2] sm:$0xff]  ;;  %v24_v6 = vld [vmem:[#allocation2 + $0x8] sm:$0xff] }
   0x9   :  { %142 = vmatmul.mubr.msk.bf16.vlgmr.msra.gmra.mrb[0].mxu0 %vm20_vm1, %v152_v3  ;;  %p160_p3 = por %p159_p2, %p158_p1 }
   0xb   :  { %p161_p4 = pnand %p160_p3, %p154_p0 }
  0xdc   :  { %v86_v5 = vpop.f32.mrb[0].mxu0 }
  0xdd   :  { %v93_v7 = vadd.f32 %v86_v5, %v23_v4  ;;  %v143_v8 = vpop.f32.mrb[1].mxu0 }
  0xde   :  { %v89_v9 = vpop.f32.mrb[2].mxu0 }
  0xdf   :  { %95 = vst.msk [vmem:[#allocation2] sm:$0xff] %vm20_vm1, %v93_v7  ;;  %v94_v10 = vadd.f32 %v89_v9, %v24_v6  ;;  %v144_v11 = vpop.f32.mrb[3].mxu0 }
  0xe1   :  { %96 = vst.msk [vmem:[#allocation2 + $0x8] sm:$0xff] %vm20_vm1, %v94_v10 }
  0xe6   :  { %v100_v13 = vld [vmem:[#allocation2] sm:$0xff] }
  0xe7   :  { %v109_v14 = vadd.f32 %v133_v12, %v100_v13 }
  0xe8   :  { %v101_v15 = vld [vmem:[#allocation2 + $0x8] sm:$0xff] }
  0xe9   :  { %v110_v16 = vadd.f32 %v133_v12, %v101_v15  ;;  %111 = vst.msk [vmem:[#allocation3] sm:$0xff] %vm20_vm1, %v109_v14 }
  0xeb   :  { %112 = vst.msk [vmem:[#allocation3 + $0x8] sm:$0xff] %vm20_vm1, %v110_v16 }
  0xec   :  { %164 = shalt.err (!%p161_p4)
}
  0xed   :  { %s165_s22 = scalar_lea.hbm %s236_s3, 256 }
  0xee   :  { %p166_p5 = scmp.ne.s32.totalorder %s236_s3, %s165_s22  ;;  %p169_p6 = scmp.lt.u32.totalorder %s165_s22, %s236_s3 }
  0xf0   :  { %p171_p7 = pnand %p169_p6, %p166_p5 }
  0xf2   :  { %174 = shalt.err (!%p171_p7)
}
  0xf3   :  { %s180_s27 = smov 128   ;;  %s181_s28 = smov 8  }
  0xf4   :  { %124 = dma.vmem_to_hbm [thread:$0]  %s119_s19, 256, %s236_s3, [#allocation4], %s180_s27, %s180_s27, %s181_s28  }
  0xf5   :  { %175 = dma.done.wait [#allocation4], 256  }
  0xf6   :  { %176 = vsyncadd [#allocation4], 4294967040 }
  0xf7   :  { %128 = vsyncpa [#allocation4], 1 }

// kernel: text_module_forward.39
= control target key start
LH: loop header
LB: loop body
LE: loop exit
PB: predicated region body
PF: predicated region fallthrough
CT: control target
= control target key end

     0   :  { %vm25_vm0 = vcmask 261120   ;;  %v304_v0 = vmov 0.0   ;;  %vm305_vm1 = vmmov 0   ;;  %s388_s1 = inlined_call_operand.vmem [shape: bf16[32,128], index: 1, kind: input, shape index: {}]   ;;  %s389_s3 = inlined_call_operand.vmem [shape: bf16[128,32], index: 3, kind: input, shape index: {}]   ;;  %s390_s0 = inlined_call_operand.vmem [shape: bf16[16,32], index: 0, kind: input, shape index: {}]   ;;  %s391_s2 = inlined_call_operand.vmem [shape: f32[1,128], index: 2, kind: input, shape index: {}]   ;;  %s392_s4 = inlined_call_operand.vmem [shape: f32[1,32], index: 4, kind: input, shape index: {}]   ;;  %s393_s5 = inlined_call_operand.vmem [shape: f32[16,32], index: 5, kind: output, shape index: {}]  }
   0x1   :  { %263 = vmatprep.subr.bf16.mxu0 %v304_v0  ;;  %v293_v1 = vld [vmem:[%s388_s1] sm:$0xff]   ;;  %267 = vmatprep.mubr.msk.bf16.mxu0 %vm305_vm1, %v304_v0  ;;  %26 = vst.msk [vmem:[#allocation2] sm:$0xff] %vm25_vm0, %v304_v0  ;;  %27 = vst.msk [vmem:[#allocation2 + $0x8] sm:$0xff] %vm25_vm0, %v304_v0  ;;  %v294_v2 = vld [vmem:[%s388_s1 + $0x8] sm:$0xff]  }
   0x2   :  { %271 = vmatprep.subr.bf16.mxu1 %v304_v0  ;;  %287 = vmatprep.mubr.msk.bf16.mxu1 %vm305_vm1, %v304_v0  ;;  %v296_v3 = vld [vmem:[%s389_s3] sm:$0xff]   ;;  %v297_v5 = vld [vmem:[%s389_s3 + $0x8] sm:$0xff]   ;;  %v298_v6 = vld [vmem:[%s389_s3 + $0x10] sm:$0xff]  }
   0x3   :  { %264 = vmatpush3.bf16.msra.mxu0 %v293_v1  ;;  %v295_v4 = vld [vmem:[%s390_s0] sm:$0xff]   ;;  %272 = vmatpush3.bf16.msra.mxu1 %v296_v3  ;;  %v299_v7 = vld [vmem:[%s389_s3 + $0x18] sm:$0xff]   ;;  %v301_v9 = vld [vmem:[%s389_s3 + $0x28] sm:$0xff]  }
   0x4   :  { %265 = vmatprep.subr.bf16.mxu0 %v304_v0  ;;  %273 = vmatprep.subr.bf16.mxu1 %v304_v0  ;;  %v300_v8 = vld [vmem:[%s389_s3 + $0x20] sm:$0xff]   ;;  %v302_v10 = vld [vmem:[%s389_s3 + $0x30] sm:$0xff]   ;;  %v303_v11 = vld [vmem:[%s389_s3 + $0x38] sm:$0xff]  }
   0x5   :  { %v237_v12 = vld [vmem:[%s391_s2] ss:$0 sm:$0xff] }
   0x6   :  { %v250_v30 = vld [vmem:[%s392_s4] ss:$0 sm:$0xff] }
   0x7   :  { %266 = vmatpush3.bf16.msra.mxu0 %v294_v2  ;;  %274 = vmatpush3.bf16.msra.mxu1 %v297_v5 }
   0x8   :  { %275 = vmatprep.subr.bf16.mxu1 %v304_v0  ;;  %v106_v22 = vld [vmem:[#allocation2] sm:$0xff]  ;;  %v107_v24 = vld [vmem:[#allocation2 + $0x8] sm:$0xff] }
   0xa   :  { %268 = vmatmul.mubr.msk.bf16.vlgmr.msra.gmra.mrb[0].mxu0 %vm25_vm0, %v295_v4 }
   0xb   :  { %276 = vmatpush3.bf16.msra.mxu1 %v298_v6 }
   0xc   :  { %277 = vmatprep.subr.bf16.mxu1 %v304_v0 }
   0xf   :  { %278 = vmatpush3.bf16.msra.mxu1 %v299_v7 }
  0x10   :  { %279 = vmatprep.subr.bf16.mxu1 %v304_v0 }
  0x13   :  { %280 = vmatpush3.bf16.msra.mxu1 %v300_v8 }
  0x14   :  { %281 = vmatprep.subr.bf16.mxu1 %v304_v0 }
  0x17   :  { %282 = vmatpush3.bf16.msra.mxu1 %v301_v9 }
  0x18   :  { %283 = vmatprep.subr.bf16.mxu1 %v304_v0 }
  0x1b   :  { %284 = vmatpush3.bf16.msra.mxu1 %v302_v10 }
  0x1c   :  { %285 = vmatprep.subr.bf16.mxu1 %v304_v0 }
  0x1f   :  { %286 = vmatpush3.bf16.msra.mxu1 %v303_v11 }
  0xdd   :  { %v96_v13 = vpop.f32.mrb[0].mxu0 }
  0xde   :  { %v97_v14 = vadd.f32 %v237_v12, %v96_v13  ;;  %v269_v15 = vpop.f32.mrb[1].mxu0 }
  0xdf   :  { %v99_v16 = vpop.f32.mrb[2].mxu0 }
  0xe0   :  { %v100_v17 = vadd.f32 %v237_v12, %v99_v16  ;;  %v270_v18 = vpop.f32.mrb[3].mxu0  ;;  %v103_v19 = vmax.f32 %v97_v14, 0.0 }
  0xe2   :  { %v104_v20 = vmax.f32 %v100_v17, 0.0 }
  0xe4   :  { %v105_v21 = vpack.c.bf16 %v104_v20, %v103_v19 }
  0xe6   :  { %288 = vmatmul.mubr.bf16.vlgmr.msra.gmra.mrb[0].mxu1 %v105_v21 }
 0x1b9   :  { %v206_v23 = vpop.f32.mrb[0].mxu1 }
 0x1ba   :  { %v213_v25 = vadd.f32 %v206_v23, %v106_v22  ;;  %v289_v26 = vpop.f32.mrb[1].mxu1 }
 0x1bb   :  { %v209_v27 = vpop.f32.mrb[2].mxu1 }
 0x1bc   :  { %215 = vst.msk [vmem:[#allocation2] sm:$0xff] %vm25_vm0, %v213_v25  ;;  %v214_v28 = vadd.f32 %v209_v27, %v107_v24  ;;  %v290_v29 = vpop.f32.mrb[3].mxu1 }
 0x1be   :  { %216 = vst.msk [vmem:[#allocation2 + $0x8] sm:$0xff] %vm25_vm0, %v214_v28 }
 0x1c3   :  { %v220_v31 = vld [vmem:[#allocation2] sm:$0xff] }
 0x1c4   :  { %v229_v32 = vadd.f32 %v250_v30, %v220_v31 }
 0x1c5   :  { %v221_v33 = vld [vmem:[#allocation2 + $0x8] sm:$0xff] }
 0x1c6   :  { %231 = vst.msk [vmem:[%s393_s5] sm:$0xff] %vm25_vm0, %v229_v32  ;;  %v230_v34 = vadd.f32 %v250_v30, %v221_v33 }
 0x1c8   :  { %232 = vst.msk [vmem:[%s393_s5 + $0x8] sm:$0xff] %vm25_vm0, %v230_v34 }

// kernel: text_module_forward.48
= control target key start
LH: loop header
LB: loop body
LE: loop exit
PB: predicated region body
PF: predicated region fallthrough
CT: control target
= control target key end

     0   :  { %s916_s12 = smov 0   ;;  %s1021_s0 = inlined_call_operand.vmem [shape: bf16[2,8,32], index: 0, kind: input, shape index: {}]   ;;  %s1022_s1 = inlined_call_operand.vmem [shape: bf16[2,8,32], index: 1, kind: input, shape index: {}]   ;;  %s1023_s2 = inlined_call_operand.vmem [shape: bf16[2,8,32], index: 2, kind: input, shape index: {}]   ;;  %s1024_s3 = inlined_call_operand.vmem [shape: f32[2,8,32], index: 3, kind: output, shape index: {}]  }
   0x1 LB: > { %s759_s13 = sadd.s32 4294967295, %s886_s12   ;;  %p763_p0 = scmp.ge.s32.totalorder %s886_s12, 1  ;;  %s886_s12 = sphi %s916_s12, %s13_s12  }
   0x2   : > { %p154_p1 = scmp.lt.s32.totalorder %s886_s12, 3 }
   0x4   : > { %p155_p2 = pnand %p763_p0, %p154_p1 }
   0x5   : > { %p184_p3 = scmp.lt.s32.totalorder (!%p155_p2), %s759_s13, 1  ;;  %v888_v0 = vmov (!%p155_p2), 0.0   ;;  %vm889_vm0 = vmmov (!%p155_p2), 0   ;;  %vm210_vm1 = vcmask (!%p155_p2), 64512   ;;  %v204_v4 = vlaneseq (!%p155_p2)  ;;  %s890_s21 = smov (!%p155_p2), 120  }
   0x6   : > { %158 = sbr.rel (%p155_p2) target bundleno = 1479 (0x5c7), region = 32  ;;  %797 = vmatprep.subr.bf16.mxu0 (!%p155_p2), %v888_v0  ;;  %799 = vmatprep.mubr.msk.bf16.mxu0 (!%p155_p2), %vm889_vm0, %v888_v0  ;;  %s891_s22 = smov (!%p155_p2), 112   ;;  %vm274_vm3 = vcmask (!%p155_p2), 1043456   ;;  %vm676_vm4 = vcmask (!%p155_p2), 130048   ;;  %vm678_vm5 = vcmask (!%p155_p2), 195584   ;;  %vm680_vm6 = vcmask (!%p155_p2), 261120  }
   0x7   : > { %803 = vmatprep.subr.bf16.mxu1 (!%p155_p2), %v888_v0  ;;  %805 = vmatprep.mubr.msk.bf16.mxu1 (!%p155_p2), %vm889_vm0, %v888_v0  ;;  %v205_v5 = vshrl.u32 (!%p155_p2), %v204_v4, 7  ;;  %v207_v6 = vand.u32 (!%p155_p2), 127, %v204_v4  ;;  %s892_s23 = smov (!%p155_p2), 104   ;;  %s893_s27 = smov (!%p155_p2), 8  }
   0x8   : > { %s894_s28 = smov (!%p155_p2), 16   ;;  %s895_s29 = smov (!%p155_p2), 24  }
   0x9   : > { %vm208_vm2 = vcmp.gt.s32.totalorder (!%p155_p2), %v207_v6, %v205_v5 }
   0xa   : > { %v949_v8 = vsel (!%p155_p2), %vm208_vm2, -1e+30, %v888_v0 }
   0xd   : > { %s1026_s13 = smov (!%p184_p3, %s759_s13), 1 }
   0xe   : > { %s933_s14 = sshll.u32 %s1026_s13, 2  ;;  %s767_s30 = sshll.u32 %s1026_s13, 3 }
   0xf   : > { %s191_s17 = scalar_lea.vmem %s1022_s1, %s933_s14  ;;  %s187_s20 = scalar_lea.vmem %s1021_s0, %s933_s14 }
  0x10   : > { %v202_v1 = vld [vmem:[%s191_s17] sm:$0xf]  ;;  %s195_s26 = scalar_lea.vmem %s1023_s2, %s933_s14  ;;  %s199_s6 = scalar_lea.vmem %s1024_s3, %s767_s30 }
  0x11   : > { %v215_v2 = vsel %vm210_vm1, %v202_v1, 0  ;;  %v201_v3 = vld [vmem:[%s187_s20] sm:$0xf]  ;;  %v771_v15 = vcombine.low %v202_v1, %v202_v1 }
  0x12   : > { %798 = vmatpush3.bf16.xpose.msra.mxu0 %v215_v2  ;;  %v770_v16 = vcombine.low %v201_v3, %v201_v3  ;;  %v963_v22 = vld [vmem:[%s195_s26] sm:$0xf] }
  0x13   : > { %815 = vmatprep.subr.bf16.mxu0 %v888_v0  ;;  %326 = vrot.lane.b32.xlu1 %v771_v15, %s890_s21  ;;  %v276_v23 = vsel %vm274_vm3, %v963_v22, 0 }
  0x14   : > { %804 = vmatpush3.bf16.msra.mxu1 %v276_v23 }
  0x15   : > { %809 = vmatprep.subr.bf16.mxu1 %v888_v0 }
  0x17   : > { %321 = vrot.lane.b32.xlu1 %v770_v16, %s890_s21 }
  0x19   : > { %800 = vmatmul.mubr.msk.bf16.vlgmr.msra.gmra.mrb[0].mxu0 %vm210_vm1, %v201_v3 }
  0x1a   : > { %817 = vmatprep.mubr.msk.bf16.mxu0 %vm889_vm0, %v888_v0 }
  0x1b   : > { %439 = vrot.lane.b32.xlu1 %v770_v16, %s891_s22 }
  0x1f   : > { %553 = vrot.lane.b32.xlu1 %v771_v15, %s892_s23 }
  0x23   : > { %551 = vrot.lane.b32.xlu1 %v770_v16, %s892_s23 }
  0x85   : > { %v327_v26 = vpop.permute.xlu1 %326 }
  0x86   : > { %v332_v28 = vsel %vm210_vm1, %v327_v26, 0 }
  0x89   : > { %v322_v30 = vpop.permute.xlu1 %321 }
  0x8d   : > { %v440_v32 = vpop.permute.xlu1 %439 }
  0x91   : > { %v554_v34 = vpop.permute.xlu1 %553 }
  0x92   : > { %v559_v35 = vsel %vm210_vm1, %v554_v34, 0 }
  0x95   : > { %v552_v36 = vpop.permute.xlu1 %551 }
  0xec   : > { %v251_v7 = vpop.f32.mrb[0].mxu0 }
  0xed   : > { %v257_v9 = vmul.f32 0.35355338, %v251_v7  ;;  %v801_v10 = vpop.f32.mrb[1].mxu0 }
  0xee   : > { %v254_v11 = vpop.f32.mrb[2].mxu0 }
  0xef   : > { %v802_v12 = vpop.f32.mrb[3].mxu0  ;;  %v258_v13 = vadd.f32 %v257_v9, %v949_v8 }
  0xf1   : > { %v259_v14 = vsel %vm210_vm1, %v258_v13, -inf }
  0xf2   : > { %260 = vmax.xlane.f32.xlu0 %v259_v14 }
 0x17f   : > { %v261_v17 = vpop.xlane.xlu0 %260 }
 0x180   : > { %v262_v18 = vsub.f32 %v258_v13, %v261_v17 }
 0x182   : > { %v263_v19 = vmul.f32 1.442695, %v262_v18 }
 0x184   : > { %864 = vpow2.f32 %v263_v19 }
 0x18e   : > { %v865_v20 = vpop.eup %864 }
 0x18f   : > { %v265_v21 = vsel %vm210_vm1, %v865_v20, 0.0 }
 0x190   : > { %266 = vadd.xlane.f32.xlu0 %v265_v21 }
 0x1a6   : > { %441 = vrot.lane.b32.xlu0 %v771_v15, %s891_s22 }
 0x21d   : > { %v267_v24 = vpop.xlane.xlu0 %266 }
 0x21e   : > { %866 = vrcp.f32 %v267_v24 }
 0x221   : > { %v442_v31 = vpop.permute.xlu0 %441 }
 0x222   : > { %v447_v33 = vsel %vm210_vm1, %v442_v31, 0 }
 0x228   : > { %v867_v25 = vpop.eup %866 }
 0x229   : > { %v269_v27 = vmul.f32 %v867_v25, %v865_v20 }
 0x22b   : > { %v270_v29 = vpack.c.bf16 %v269_v27, %v269_v27 }
 0x22d   : > { %806 = vmatmul.mubr.msk.bf16.vlgmr.msra.gmra.mrb[0].mxu1 %vm210_vm1, %v270_v29 }
 0x22e   : > { %810 = vmatpush3.bf16.xpose.msra.mxu1 %v332_v28  ;;  %811 = vmatprep.mubr.msk.bf16.mxu1 %vm889_vm0, %v888_v0 }
 0x22f   : > { %821 = vmatprep.subr.bf16.mxu1 %v888_v0 }
 0x235   : > { %812 = vmatmul.mubr.msk.bf16.vlgmr.msra.gmra.mrb[4].mxu1 %vm210_vm1, %v322_v30 }
 0x236   : > { %822 = vmatpush3.bf16.xpose.msra.mxu1 %v447_v33  ;;  %823 = vmatprep.mubr.msk.bf16.mxu1 %vm889_vm0, %v888_v0 }
 0x237   : > { %833 = vmatprep.subr.bf16.mxu1 %v888_v0 }
 0x23d   : > { %824 = vmatmul.mubr.msk.bf16.vlgmr.msra.gmra.mrb[8].mxu1 %vm210_vm1, %v440_v32 }
 0x23e   : > { %834 = vmatpush3.bf16.xpose.msra.mxu1 %v559_v35  ;;  %835 = vmatprep.mubr.msk.bf16.mxu1 %vm889_vm0, %v888_v0 }
 0x245   : > { %836 = vmatmul.mubr.msk.bf16.vlgmr.msra.gmra.mrb[12].mxu1 %vm210_vm1, %v552_v36 }
 0x300   : > { %v984_v37 = vpop.f32.mrb[0].mxu1 }
 0x301   : > { %v807_v38 = vpop.f32.mrb[1].mxu1 }
 0x302   : > { %v315_v39 = vpop.f32.mrb[2].mxu1 }
 0x303   : > { %v808_v40 = vpop.f32.mrb[3].mxu1 }
 0x308   : > { %v368_v41 = vpop.f32.mrb[4].mxu1 }
 0x309   : > { %v374_v42 = vmul.f32 0.35355338, %v368_v41  ;;  %v813_v43 = vpop.f32.mrb[5].mxu1 }
 0x30a   : > { %v371_v44 = vpop.f32.mrb[6].mxu1 }
 0x30b   : > { %v814_v45 = vpop.f32.mrb[7].mxu1  ;;  %v375_v46 = vadd.f32 %v374_v42, %v949_v8 }
 0x30d   : > { %v376_v47 = vsel %vm210_vm1, %v375_v46, -inf }
 0x30e   : > { %377 = vmax.xlane.f32.xlu1 %v376_v47 }
 0x310   : > { %v483_v48 = vpop.f32.mrb[8].mxu1 }
 0x311   : > { %v489_v49 = vmul.f32 0.35355338, %v483_v48  ;;  %v825_v50 = vpop.f32.mrb[9].mxu1 }
 0x312   : > { %v486_v51 = vpop.f32.mrb[10].mxu1 }
 0x313   : > { %v490_v52 = vadd.f32 %v489_v49, %v949_v8  ;;  %v826_v53 = vpop.f32.mrb[11].mxu1 }
 0x315   : > { %v491_v54 = vsel %vm210_vm1, %v490_v52, -inf }
 0x316   : > { %492 = vmax.xlane.f32.xlu0 %v491_v54 }
 0x318   : > { %v595_v55 = vpop.f32.mrb[12].mxu1 }
 0x319   : > { %v601_v56 = vmul.f32 0.35355338, %v595_v55  ;;  %v837_v57 = vpop.f32.mrb[13].mxu1 }
 0x31a   : > { %v598_v58 = vpop.f32.mrb[14].mxu1 }
 0x31b   : > { %v602_v59 = vadd.f32 %v601_v56, %v949_v8  ;;  %v838_v60 = vpop.f32.mrb[15].mxu1  ;;  %v773_v8 = vcombine.low %v963_v22, %v963_v22 }
 0x31d   : > { %v603_v61 = vsel %vm210_vm1, %v602_v59, -inf }
 0x31e   : > { %604 = vmax.xlane.f32.xlu1 %v603_v61 }
 0x39b   : > { %v378_v62 = vpop.xlane.xlu1 %377 }
 0x39c   : > { %v379_v63 = vsub.f32 %v375_v46, %v378_v62 }
 0x39e   : > { %v380_v1 = vmul.f32 1.442695, %v379_v63 }
 0x3a0   : > { %868 = vpow2.f32 %v380_v1 }
 0x3a3   : > { %v493_v2 = vpop.xlane.xlu0 %492 }
 0x3a4   : > { %v494_v3 = vsub.f32 %v490_v52, %v493_v2 }
 0x3a6   : > { %v495_v4 = vmul.f32 1.442695, %v494_v3 }
 0x3a8   : > { %870 = vpow2.f32 %v495_v4 }
 0x3aa   : > { %v869_v5 = vpop.eup %868 }
 0x3ab   : > { %v382_v6 = vsel %vm210_vm1, %v869_v5, 0.0  ;;  %v605_v10 = vpop.xlane.xlu1 %604 }
 0x3ac   : > { %383 = vadd.xlane.f32.xlu1 %v382_v6  ;;  %v606_v11 = vsub.f32 %v602_v59, %v605_v10 }
 0x3ae   : > { %v607_v12 = vmul.f32 1.442695, %v606_v11 }
 0x3b0   : > { %872 = vpow2.f32 %v607_v12 }
 0x3b2   : > { %v871_v7 = vpop.eup %870 }
 0x3b3   : > { %v497_v9 = vsel %vm210_vm1, %v871_v7, 0.0 }
 0x3b4   : > { %498 = vadd.xlane.f32.xlu0 %v497_v9 }
 0x3ba   : > { %v873_v13 = vpop.eup %872 }
 0x3bb   : > { %v609_v14 = vsel %vm210_vm1, %v873_v13, 0.0 }
 0x3bd   : > { %503 = vrot.lane.b32.xlu1 %v773_v8, %s891_s22 }
 0x3ca   : > { %391 = vrot.lane.b32.xlu0 %v773_v8, %s890_s21 }
 0x3e1   : > { %610 = vadd.xlane.f32.xlu1 %v609_v14 }
 0x3f2   : > { %615 = vrot.lane.b32.xlu1 %v773_v8, %s892_s23 }
 0x439   : > { %v384_v15 = vpop.xlane.xlu1 %383 }
 0x43a   : > { %874 = vrcp.f32 %v384_v15 }
 0x43d   : > { %v504_v21 = vpop.permute.xlu1 %503 }
 0x43e   : > { %v509_v23 = vsel %vm274_vm3, %v504_v21, 0 }
 0x441   : > { %v499_v16 = vpop.xlane.xlu0 %498 }
 0x442   : > { %876 = vrcp.f32 %v499_v16 }
 0x444   : > { %v875_v17 = vpop.eup %874 }
 0x445   : > { %v386_v18 = vmul.f32 %v875_v17, %v869_v5  ;;  %v392_v19 = vpop.permute.xlu0 %391 }
 0x446   : > { %v397_v20 = vsel %vm274_vm3, %v392_v19, 0 }
 0x447   : > { %816 = vmatpush3.bf16.msra.mxu0 %v397_v20  ;;  %v387_v22 = vpack.c.bf16 %v386_v18, %v386_v18 }
 0x448   : > { %827 = vmatprep.subr.bf16.mxu0 %v888_v0 }
 0x44a   : > { %818 = vmatmul.mubr.msk.bf16.vlgmr.msra.gmra.mrb[4].mxu0 %vm210_vm1, %v387_v22 }
 0x44b   : > { %828 = vmatpush3.bf16.msra.mxu0 %v509_v23  ;;  %829 = vmatprep.mubr.msk.bf16.mxu0 %vm889_vm0, %v888_v0 }
 0x44c   : > { %v877_v24 = vpop.eup %876  ;;  %839 = vmatprep.subr.bf16.mxu0 %v888_v0 }
 0x44d   : > { %v501_v25 = vmul.f32 %v877_v24, %v871_v7 }
 0x44f   : > { %v502_v26 = vpack.c.bf16 %v501_v25, %v501_v25 }
 0x452   : > { %830 = vmatmul.mubr.msk.bf16.vlgmr.msra.gmra.mrb[8].mxu0 %vm210_vm1, %v502_v26 }
 0x453   : > { %841 = vmatprep.mubr.msk.bf16.mxu0 %vm889_vm0, %v888_v0 }
 0x46e   : > { %v611_v27 = vpop.xlane.xlu1 %610 }
 0x46f   : > { %878 = vrcp.f32 %v611_v27 }
 0x472   : > { %v616_v28 = vpop.permute.xlu1 %615 }
 0x473   : > { %v621_v29 = vsel %vm274_vm3, %v616_v28, 0 }
 0x474   : > { %840 = vmatpush3.bf16.msra.mxu0 %v621_v29 }
 0x479   : > { %v879_v30 = vpop.eup %878 }
 0x47a   : > { %v613_v31 = vmul.f32 %v879_v30, %v873_v13 }
 0x47c   : > { %v614_v32 = vpack.c.bf16 %v613_v31, %v613_v31 }
 0x47e   : > { %842 = vmatmul.mubr.msk.bf16.vlgmr.msra.gmra.mrb[12].mxu0 %vm210_vm1, %v614_v32 }
 0x51d   : > { %v433_v33 = vpop.f32.mrb[4].mxu0 }
 0x51e   : > { %664 = vrot.lane.b32.xlu0 %v433_v33, %s893_s27  ;;  %v819_v34 = vpop.f32.mrb[5].mxu0 }
 0x51f   : > { %v436_v35 = vpop.f32.mrb[6].mxu0 }
 0x520   : > { %v820_v36 = vpop.f32.mrb[7].mxu0 }
 0x525   : > { %v545_v38 = vpop.f32.mrb[8].mxu0 }
 0x526   : > { %668 = vrot.lane.b32.xlu1 %v545_v38, %s894_s28  ;;  %v831_v0 = vpop.f32.mrb[9].mxu0 }
 0x527   : > { %v548_v39 = vpop.f32.mrb[10].mxu0 }
 0x528   : > { %v832_v40 = vpop.f32.mrb[11].mxu0 }
 0x551   : > { %v657_v41 = vpop.f32.mrb[12].mxu0 }
 0x552   : > { %672 = vrot.lane.b32.xlu0 %v657_v41, %s895_s29  ;;  %v843_v42 = vpop.f32.mrb[13].mxu0 }
 0x553   : > { %v660_v43 = vpop.f32.mrb[14].mxu0 }
 0x554   : > { %v844_v44 = vpop.f32.mrb[15].mxu0 }
 0x590   : > { %v665_v45 = vpop.permute.xlu0 %664 }
 0x591   : > { %v675_v47 = vsel %vm210_vm1, %v984_v37, %v665_v45 }
 0x598   : > { %v669_v46 = vpop.permute.xlu1 %668 }
 0x599   : > { %v677_v48 = vsel %vm676_vm4, %v675_v47, %v669_v46 }
 0x5c4   : > { %v673_v49 = vpop.permute.xlu0 %672 }
 0x5c5   : > { %v679_v50 = vsel %vm678_vm5, %v677_v48, %v673_v49 }
 0x5c6   : > { %681 = vst.msk [vmem:[%s199_s6] sm:$0xff] %vm680_vm6, %v679_v50 }
 0x5c7 PF: > { %s13_s12 = sadd.s32 1, %s886_s12  }
 0x5c8   : > { %p10_p4 = scmp.ge.s32.totalorder %s13_s12, 4  }
 0x5ca   :  { %12 = sbr.rel (!%p10_p4) target bundleno = 1 (0x1), region = 68 }

</bundles_post_ra>
